<compile_context>
chip_gen: v6e
topology: v6e:2x2x1
jax: 0.10.0
libtpu: 0.0.40
codegen_flags: <defaults>
</compile_context>

<pallas_src>
import functools

import jax
import jax.numpy as jnp
from jax import lax
from jax.experimental import pallas as pl
from jax.experimental.pallas import tpu as pltpu


# ---------------------------------------------------------------------------
# Fused kernel: entire forward pass for ONE batch sample per grid step.
# Compute layout: activations are (C, P) -- channels on sublanes, pixels on lanes.
# ---------------------------------------------------------------------------
def _noise_predictor_kernel(y_ref, patches_ref,
                            w12_ref, b12_ref,
                            w3_ref, b3_ref,
                            w4_ref, b4_ref,
                            w5_ref, b5_ref,
                            o_ref, *, n_elem, neg_slope):
    # y_ref       : (N,) in SMEM -- per-sample scalar y
    # patches_ref : (1, K*K*in_nc, P) im2col'd reflect-padded input (features, pixels)
    # w*_ref      : (C_out, C_in) weight matrices, b*_ref: (C_out, 1) biases (VMEM-resident)
    # o_ref       : (1, out_nc, P)
    yv = y_ref[pl.program_id(0)]                    # scalar (SMEM read)

    x = patches_ref[0]                              # (K*K*in_nc, P)
    # conv1 (7x7 reflect) with conv2 (1x1) pre-folded into one matmul.
    h = jnp.dot(w12_ref[...], x, preferred_element_type=jnp.float32) + b12_ref[...]

    def norm_scale_act(h):
        # Per-sample stats over all of (C, H, W); torch.std default is unbiased (n-1).
        # Single pass: sum and sum-of-squares, then E[x^2] - E[x]^2.
        s1 = jnp.sum(h)
        s2 = jnp.sum(h * h)
        mean = s1 / n_elem
        var = (s2 - n_elem * mean * mean) / (n_elem - 1.0)
        # Fold y and 1/(std+1e-5) into a single scalar scale.
        scale = yv / (jnp.sqrt(var) + 1e-5)
        h = (h - mean) * scale
        return jnp.maximum(h, neg_slope * h)        # LeakyReLU (0 < slope < 1)

    h = norm_scale_act(h)
    h = jnp.dot(w3_ref[...], h, preferred_element_type=jnp.float32) + b3_ref[...]
    h = norm_scale_act(h)
    h = jnp.dot(w4_ref[...], h, preferred_element_type=jnp.float32) + b4_ref[...]
    h = norm_scale_act(h)
    h = jnp.dot(w5_ref[...], h, preferred_element_type=jnp.float32) + b5_ref[...]
    o_ref[0] = (h * h).astype(o_ref.dtype)          # x ** 2


# ---------------------------------------------------------------------------
# Wrapper: reflect pad + im2col directly in NCHW (no transposes), weight folding,
# then one fused pallas_call.
# ---------------------------------------------------------------------------
def _im2col_reflect_cp(x_nchw, K):
    """Reflect-pad NCHW and extract KxK patches -> (N, K*K*C, H*W).

    Feature-axis ordering is (kh, kw, ci); pixel axis is row-major (h, w).
    """
    pad = (K - 1) // 2
    N, C, H, W = x_nchw.shape
    xp = jnp.pad(x_nchw, ((0, 0), (0, 0), (pad, pad), (pad, pad)), mode="reflect")
    cols = [xp[:, :, kh:kh + H, kw:kw + W].reshape(N, C, H * W)
            for kh in range(K) for kw in range(K)]
    return jnp.concatenate(cols, axis=1)            # (N, K*K*C, H*W)


def noise_level_predictor(x_nchw, y, params, *, K=7, neg_slope=0.01):
    N, in_nc, H, W = x_nchw.shape
    nc = params["w2"].shape[0]
    out_nc = params["w5"].shape[0]
    P = H * W
    KKC = K * K * in_nc

    x = x_nchw.astype(jnp.float32)
    patches = _im2col_reflect_cp(x, K)              # (N, KKC, P)
    y_vec = jnp.asarray(y, jnp.float32).reshape(N)  # one scalar per sample -> SMEM

    # Fold conv2 (1x1) into conv1 -- exact, no nonlinearity in between:
    #   h2 = W2 @ (W1 @ patches + b1) + b2 = (W2 @ W1) @ patches + (W2 @ b1 + b2)
    # w1 is OIHW; rows of the matrix are ordered (kh, kw, ci) to match im2col above.
    w1mat = jnp.transpose(params["w1"], (0, 2, 3, 1)).reshape(nc, KKC)   # (co, kh*kw*ci)
    w12 = params["w2"] @ w1mat                                           # (nc, KKC)
    b12 = params["w2"] @ params["b1"] + params["b2"]                     # (nc,)

    kern = functools.partial(_noise_predictor_kernel,
                             n_elem=float(P * nc), neg_slope=neg_slope)
    const2 = lambda n: (0, 0)                       # weights/biases: same block every step

    out = pl.pallas_call(
        kern,
        out_shape=jax.ShapeDtypeStruct((N, out_nc, P), jnp.float32),
        grid=(N,),
        in_specs=[
            pl.BlockSpec(memory_space=pltpu.MemorySpace.SMEM),            # y (N,)
            pl.BlockSpec((1, KKC, P), lambda n: (n, 0, 0)),               # im2col patches
            pl.BlockSpec((nc, KKC), const2), pl.BlockSpec((nc, 1), const2),      # conv1*conv2
            pl.BlockSpec((nc, nc), const2), pl.BlockSpec((nc, 1), const2),       # conv3
            pl.BlockSpec((nc, nc), const2), pl.BlockSpec((nc, 1), const2),       # conv4
            pl.BlockSpec((out_nc, nc), const2), pl.BlockSpec((out_nc, 1), const2),  # conv5
        ],
        out_specs=pl.BlockSpec((1, out_nc, P), lambda n: (n, 0, 0)),
        compiler_params=pltpu.CompilerParams(
            dimension_semantics=("parallel",)),      # one sample per TensorCore on v7x
    )(y_vec, patches,
      w12, b12.reshape(nc, 1),
      params["w3"], params["b3"].reshape(nc, 1),
      params["w4"], params["b4"].reshape(nc, 1),
      params["w5"], params["b5"].reshape(out_nc, 1))

    return out.reshape(N, out_nc, H, W)             # channels already leading: no transpose


# ---------------------------------------------------------------------------
# Deterministic synthetic parameters (PyTorch layouts: OIHW conv1, (co, ci) 1x1).
# ---------------------------------------------------------------------------
def init_params(key, in_nc=3, out_nc=3, nc=96, K=7):
    ks = jax.random.split(key, 10)
    s = 0.05
    p = {}
    p["w1"] = s * jax.random.normal(ks[0], (nc, in_nc, K, K), jnp.float32)   # OIHW
    p["b1"] = s * jax.random.normal(ks[1], (nc,), jnp.float32)
    p["w2"] = s * jax.random.normal(ks[2], (nc, nc), jnp.float32)            # (co, ci)
    p["b2"] = s * jax.random.normal(ks[3], (nc,), jnp.float32)
    p["w3"] = s * jax.random.normal(ks[4], (nc, nc), jnp.float32)
    p["b3"] = s * jax.random.normal(ks[5], (nc,), jnp.float32)
    p["w4"] = s * jax.random.normal(ks[6], (nc, nc), jnp.float32)
    p["b4"] = s * jax.random.normal(ks[7], (nc,), jnp.float32)
    p["w5"] = s * jax.random.normal(ks[8], (out_nc, nc), jnp.float32)
    p["b5"] = s * jax.random.normal(ks[9], (out_nc,), jnp.float32)
    return p


# ---------------------------------------------------------------------------
# Pure-JAX reference (unfused, two-pass stats) for correctness checking.
# ---------------------------------------------------------------------------
def _ref_forward(x_nchw, y, params, *, K=7, neg_slope=0.01):
    x = x_nchw.astype(jnp.float32)
    pad = (K - 1) // 2
    xp = jnp.pad(x, ((0, 0), (0, 0), (pad, pad), (pad, pad)), mode="reflect")
    dn = lax.conv_dimension_numbers(xp.shape, params["w1"].shape,
                                    ("NCHW", "OIHW", "NCHW"))
    h = lax.conv_general_dilated(xp, params["w1"], (1, 1), "VALID",
                                 dimension_numbers=dn)
    h = h + params["b1"].reshape(1, -1, 1, 1)

    def conv1x1(h, w, b):
        return jnp.einsum("nchw,oc->nohw", h, w) + b.reshape(1, -1, 1, 1)

    y4 = jnp.asarray(y, jnp.float32).reshape(-1, 1, 1, 1)

    def norm_scale_act(h):
        n = h.shape[1] * h.shape[2] * h.shape[3]
        mean = jnp.mean(h, axis=(1, 2, 3), keepdims=True)
        std = jnp.sqrt(jnp.sum((h - mean) ** 2, axis=(1, 2, 3), keepdims=True) / (n - 1))
        h = (h - mean) / (std + 1e-5)
        h = h * y4
        return jnp.where(h >= 0, h, neg_slope * h)

    h = conv1x1(h, params["w2"], params["b2"])
    h = norm_scale_act(h)
    h = conv1x1(h, params["w3"], params["b3"])
    h = norm_scale_act(h)
    h = conv1x1(h, params["w4"], params["b4"])
    h = norm_scale_act(h)
    h = conv1x1(h, params["w5"], params["b5"])
    return h ** 2                                    # already NCHW


if __name__ == "__main__":
    key = jax.random.PRNGKey(0)
    kp, kx, ky = jax.random.split(key, 3)

    N, in_nc, H, W = 2, 3, 16, 16
    nc, out_nc = 96, 3

    params = init_params(kp, in_nc=in_nc, out_nc=out_nc, nc=nc)
    x = jax.random.normal(kx, (N, in_nc, H, W), jnp.float32)
    y = 0.5 + jax.random.uniform(ky, (N, 1, 1, 1), jnp.float32)   # per-sample noise scale

    out = jax.block_until_ready(noise_level_predictor(x, y, params))
    assert out.shape == (N, out_nc, H, W), out.shape

    ref = jax.block_until_ready(_ref_forward(x, y, params))
    err = float(jnp.max(jnp.abs(out - ref)))
    assert jnp.allclose(out, ref, rtol=1e-4, atol=1e-4), f"max abs err {err}"

    print("KERNEL_OK")
</pallas_src>

<mosaic_0001>
module attributes {stable_mosaic.version = 11 : i64} {
  func.func @_noise_predictor_kernel(%arg0: i32, %arg1: memref<2xf32, #tpu.memory_space<smem>>, %arg2: memref<1x147x256xf32, #tpu.memory_space<vmem>>, %arg3: memref<96x147xf32, #tpu.memory_space<vmem>>, %arg4: memref<96x1xf32, #tpu.memory_space<vmem>>, %arg5: memref<96x96xf32, #tpu.memory_space<vmem>>, %arg6: memref<96x1xf32, #tpu.memory_space<vmem>>, %arg7: memref<96x96xf32, #tpu.memory_space<vmem>>, %arg8: memref<96x1xf32, #tpu.memory_space<vmem>>, %arg9: memref<3x96xf32, #tpu.memory_space<vmem>>, %arg10: memref<3x1xf32, #tpu.memory_space<vmem>>, %arg11: memref<1x3x256xf32, #tpu.memory_space<vmem>>) attributes {dimension_semantics = [#tpu.dimension_semantics<parallel>], iteration_bounds = array<i64: 2>, scalar_prefetch = 0 : i64, scratch_operands = 0 : i64, tpu.core_type = #tpu.core_type<tc>, window_params = [{transform_indices = @transform_0, window_bounds = array<i64: 2>}, {transform_indices = @transform_1, window_bounds = array<i64: 1, 147, 256>}, {pipeline_mode = #tpu.pipeline_mode<synchronous>, transform_indices = @transform_2, window_bounds = array<i64: 96, 147>}, {pipeline_mode = #tpu.pipeline_mode<synchronous>, transform_indices = @transform_3, window_bounds = array<i64: 96, 1>}, {pipeline_mode = #tpu.pipeline_mode<synchronous>, transform_indices = @transform_4, window_bounds = array<i64: 96, 96>}, {pipeline_mode = #tpu.pipeline_mode<synchronous>, transform_indices = @transform_5, window_bounds = array<i64: 96, 1>}, {pipeline_mode = #tpu.pipeline_mode<synchronous>, transform_indices = @transform_6, window_bounds = array<i64: 96, 96>}, {pipeline_mode = #tpu.pipeline_mode<synchronous>, transform_indices = @transform_7, window_bounds = array<i64: 96, 1>}, {pipeline_mode = #tpu.pipeline_mode<synchronous>, transform_indices = @transform_8, window_bounds = array<i64: 3, 96>}, {pipeline_mode = #tpu.pipeline_mode<synchronous>, transform_indices = @transform_9, window_bounds = array<i64: 3, 1>}, {transform_indices = @transform_10, window_bounds = array<i64: 1, 3, 256>}]} {
    %0 = arith.index_cast %arg0 : i32 to index
    %1 = memref.load %arg1[%0] : memref<2xf32, #tpu.memory_space<smem>>
    %c0 = arith.constant 0 : index
    %c0_0 = arith.constant 0 : index
    %c0_1 = arith.constant 0 : index
    %2 = vector.load %arg2[%c0, %c0_0, %c0_1] : memref<1x147x256xf32, #tpu.memory_space<vmem>>, vector<1x147x256xf32>
    %3 = vector.shape_cast %2 : vector<1x147x256xf32> to vector<147x256xf32>
    %c0_2 = arith.constant 0 : index
    %c0_3 = arith.constant 0 : index
    %4 = vector.load %arg3[%c0_2, %c0_3] : memref<96x147xf32, #tpu.memory_space<vmem>>, vector<96x147xf32>
    %cst = arith.constant dense<0.000000e+00> : vector<96x256xf32>
    %5 = tpu.matmul %4, %3, %cst {dimension_numbers = #tpu.dot_dimension_numbers<[1], [0], [0], [1], [0, 0, 1, 1], [], []>} : vector<96x147xf32>, vector<147x256xf32>, vector<96x256xf32> -> vector<96x256xf32>
    %c0_4 = arith.constant 0 : index
    %c0_5 = arith.constant 0 : index
    %6 = vector.load %arg4[%c0_4, %c0_5] : memref<96x1xf32, #tpu.memory_space<vmem>>, vector<96x1xf32>
    %7 = vector.broadcast %6 : vector<96x1xf32> to vector<96x256xf32>
    %8 = arith.addf %5, %7 : vector<96x256xf32>
    %9 = vector.shape_cast %8 : vector<96x256xf32> to vector<1x96x256xf32>
    %cst_6 = arith.constant dense<0.000000e+00> : vector<1xf32>
    %10 = vector.multi_reduction <add>, %9, %cst_6 [1, 2] : vector<1x96x256xf32> to vector<1xf32>
    %11 = vector.shape_cast %10 : vector<1xf32> to vector<1x1x1xf32>
    %12 = vector.extract %11[0, 0, 0] : f32 from vector<1x1x1xf32>
    %13 = arith.mulf %8, %8 : vector<96x256xf32>
    %14 = vector.shape_cast %13 : vector<96x256xf32> to vector<1x96x256xf32>
    %cst_7 = arith.constant dense<0.000000e+00> : vector<1xf32>
    %15 = vector.multi_reduction <add>, %14, %cst_7 [1, 2] : vector<1x96x256xf32> to vector<1xf32>
    %16 = vector.shape_cast %15 : vector<1xf32> to vector<1x1x1xf32>
    %17 = vector.extract %16[0, 0, 0] : f32 from vector<1x1x1xf32>
    %cst_8 = arith.constant 2.457600e+04 : f32
    %18 = arith.divf %12, %cst_8 : f32
    %cst_9 = arith.constant 2.457600e+04 : f32
    %19 = arith.mulf %cst_9, %18 : f32
    %20 = arith.mulf %19, %18 : f32
    %21 = arith.subf %17, %20 : f32
    %cst_10 = arith.constant 2.457500e+04 : f32
    %22 = arith.divf %21, %cst_10 : f32
    %23 = math.sqrt %22 : f32
    %cst_11 = arith.constant 9.99999974E-6 : f32
    %24 = arith.addf %23, %cst_11 : f32
    %25 = arith.divf %1, %24 : f32
    %26 = vector.broadcast %18 : f32 to vector<96x256xf32>
    %27 = arith.subf %8, %26 : vector<96x256xf32>
    %28 = vector.broadcast %25 : f32 to vector<96x256xf32>
    %29 = arith.mulf %27, %28 : vector<96x256xf32>
    %cst_12 = arith.constant 0.00999999977 : f32
    %30 = vector.broadcast %cst_12 : f32 to vector<96x256xf32>
    %31 = arith.mulf %30, %29 : vector<96x256xf32>
    %32 = arith.maximumf %29, %31 : vector<96x256xf32>
    %c0_13 = arith.constant 0 : index
    %c0_14 = arith.constant 0 : index
    %33 = vector.load %arg5[%c0_13, %c0_14] : memref<96x96xf32, #tpu.memory_space<vmem>>, vector<96x96xf32>
    %cst_15 = arith.constant dense<0.000000e+00> : vector<96x256xf32>
    %34 = tpu.matmul %33, %32, %cst_15 {dimension_numbers = #tpu.dot_dimension_numbers<[1], [0], [0], [1], [0, 0, 1, 1], [], []>} : vector<96x96xf32>, vector<96x256xf32>, vector<96x256xf32> -> vector<96x256xf32>
    %c0_16 = arith.constant 0 : index
    %c0_17 = arith.constant 0 : index
    %35 = vector.load %arg6[%c0_16, %c0_17] : memref<96x1xf32, #tpu.memory_space<vmem>>, vector<96x1xf32>
    %36 = vector.broadcast %35 : vector<96x1xf32> to vector<96x256xf32>
    %37 = arith.addf %34, %36 : vector<96x256xf32>
    %38 = vector.shape_cast %37 : vector<96x256xf32> to vector<1x96x256xf32>
    %cst_18 = arith.constant dense<0.000000e+00> : vector<1xf32>
    %39 = vector.multi_reduction <add>, %38, %cst_18 [1, 2] : vector<1x96x256xf32> to vector<1xf32>
    %40 = vector.shape_cast %39 : vector<1xf32> to vector<1x1x1xf32>
    %41 = vector.extract %40[0, 0, 0] : f32 from vector<1x1x1xf32>
    %42 = arith.mulf %37, %37 : vector<96x256xf32>
    %43 = vector.shape_cast %42 : vector<96x256xf32> to vector<1x96x256xf32>
    %cst_19 = arith.constant dense<0.000000e+00> : vector<1xf32>
    %44 = vector.multi_reduction <add>, %43, %cst_19 [1, 2] : vector<1x96x256xf32> to vector<1xf32>
    %45 = vector.shape_cast %44 : vector<1xf32> to vector<1x1x1xf32>
    %46 = vector.extract %45[0, 0, 0] : f32 from vector<1x1x1xf32>
    %cst_20 = arith.constant 2.457600e+04 : f32
    %47 = arith.divf %41, %cst_20 : f32
    %cst_21 = arith.constant 2.457600e+04 : f32
    %48 = arith.mulf %cst_21, %47 : f32
    %49 = arith.mulf %48, %47 : f32
    %50 = arith.subf %46, %49 : f32
    %cst_22 = arith.constant 2.457500e+04 : f32
    %51 = arith.divf %50, %cst_22 : f32
    %52 = math.sqrt %51 : f32
    %cst_23 = arith.constant 9.99999974E-6 : f32
    %53 = arith.addf %52, %cst_23 : f32
    %54 = arith.divf %1, %53 : f32
    %55 = vector.broadcast %47 : f32 to vector<96x256xf32>
    %56 = arith.subf %37, %55 : vector<96x256xf32>
    %57 = vector.broadcast %54 : f32 to vector<96x256xf32>
    %58 = arith.mulf %56, %57 : vector<96x256xf32>
    %cst_24 = arith.constant 0.00999999977 : f32
    %59 = vector.broadcast %cst_24 : f32 to vector<96x256xf32>
    %60 = arith.mulf %59, %58 : vector<96x256xf32>
    %61 = arith.maximumf %58, %60 : vector<96x256xf32>
    %c0_25 = arith.constant 0 : index
    %c0_26 = arith.constant 0 : index
    %62 = vector.load %arg7[%c0_25, %c0_26] : memref<96x96xf32, #tpu.memory_space<vmem>>, vector<96x96xf32>
    %cst_27 = arith.constant dense<0.000000e+00> : vector<96x256xf32>
    %63 = tpu.matmul %62, %61, %cst_27 {dimension_numbers = #tpu.dot_dimension_numbers<[1], [0], [0], [1], [0, 0, 1, 1], [], []>} : vector<96x96xf32>, vector<96x256xf32>, vector<96x256xf32> -> vector<96x256xf32>
    %c0_28 = arith.constant 0 : index
    %c0_29 = arith.constant 0 : index
    %64 = vector.load %arg8[%c0_28, %c0_29] : memref<96x1xf32, #tpu.memory_space<vmem>>, vector<96x1xf32>
    %65 = vector.broadcast %64 : vector<96x1xf32> to vector<96x256xf32>
    %66 = arith.addf %63, %65 : vector<96x256xf32>
    %67 = vector.shape_cast %66 : vector<96x256xf32> to vector<1x96x256xf32>
    %cst_30 = arith.constant dense<0.000000e+00> : vector<1xf32>
    %68 = vector.multi_reduction <add>, %67, %cst_30 [1, 2] : vector<1x96x256xf32> to vector<1xf32>
    %69 = vector.shape_cast %68 : vector<1xf32> to vector<1x1x1xf32>
    %70 = vector.extract %69[0, 0, 0] : f32 from vector<1x1x1xf32>
    %71 = arith.mulf %66, %66 : vector<96x256xf32>
    %72 = vector.shape_cast %71 : vector<96x256xf32> to vector<1x96x256xf32>
    %cst_31 = arith.constant dense<0.000000e+00> : vector<1xf32>
    %73 = vector.multi_reduction <add>, %72, %cst_31 [1, 2] : vector<1x96x256xf32> to vector<1xf32>
    %74 = vector.shape_cast %73 : vector<1xf32> to vector<1x1x1xf32>
    %75 = vector.extract %74[0, 0, 0] : f32 from vector<1x1x1xf32>
    %cst_32 = arith.constant 2.457600e+04 : f32
    %76 = arith.divf %70, %cst_32 : f32
    %cst_33 = arith.constant 2.457600e+04 : f32
    %77 = arith.mulf %cst_33, %76 : f32
    %78 = arith.mulf %77, %76 : f32
    %79 = arith.subf %75, %78 : f32
    %cst_34 = arith.constant 2.457500e+04 : f32
    %80 = arith.divf %79, %cst_34 : f32
    %81 = math.sqrt %80 : f32
    %cst_35 = arith.constant 9.99999974E-6 : f32
    %82 = arith.addf %81, %cst_35 : f32
    %83 = arith.divf %1, %82 : f32
    %84 = vector.broadcast %76 : f32 to vector<96x256xf32>
    %85 = arith.subf %66, %84 : vector<96x256xf32>
    %86 = vector.broadcast %83 : f32 to vector<96x256xf32>
    %87 = arith.mulf %85, %86 : vector<96x256xf32>
    %cst_36 = arith.constant 0.00999999977 : f32
    %88 = vector.broadcast %cst_36 : f32 to vector<96x256xf32>
    %89 = arith.mulf %88, %87 : vector<96x256xf32>
    %90 = arith.maximumf %87, %89 : vector<96x256xf32>
    %c0_37 = arith.constant 0 : index
    %c0_38 = arith.constant 0 : index
    %91 = vector.load %arg9[%c0_37, %c0_38] : memref<3x96xf32, #tpu.memory_space<vmem>>, vector<3x96xf32>
    %cst_39 = arith.constant dense<0.000000e+00> : vector<3x256xf32>
    %92 = tpu.matmul %91, %90, %cst_39 {dimension_numbers = #tpu.dot_dimension_numbers<[1], [0], [0], [1], [0, 0, 1, 1], [], []>} : vector<3x96xf32>, vector<96x256xf32>, vector<3x256xf32> -> vector<3x256xf32>
    %c0_40 = arith.constant 0 : index
    %c0_41 = arith.constant 0 : index
    %93 = vector.load %arg10[%c0_40, %c0_41] : memref<3x1xf32, #tpu.memory_space<vmem>>, vector<3x1xf32>
    %94 = vector.broadcast %93 : vector<3x1xf32> to vector<3x256xf32>
    %95 = arith.addf %92, %94 : vector<3x256xf32>
    %96 = arith.mulf %95, %95 : vector<3x256xf32>
    %c0_42 = arith.constant 0 : index
    %c0_43 = arith.constant 0 : index
    %c0_44 = arith.constant 0 : index
    %97 = vector.load %arg11[%c0_42, %c0_43, %c0_44] : memref<1x3x256xf32, #tpu.memory_space<vmem>>, vector<1x3x256xf32>
    %98 = vector.shape_cast %97 : vector<1x3x256xf32> to vector<3x256xf32>
    %99 = vector.shape_cast %96 : vector<3x256xf32> to vector<1x3x256xf32>
    tpu.vector_store %arg11[%c0_42, %c0_43, %c0_44], %99 {strides = array<i32>} : memref<1x3x256xf32, #tpu.memory_space<vmem>>, vector<1x3x256xf32>,
    return
  }
  func.func @transform_0(%arg0: i32) -> i32 {
    %c0_i32 = arith.constant 0 : i32
    %c0_i32_0 = arith.constant 0 : i32
    return %c0_i32 : i32
  }
  func.func @transform_1(%arg0: i32) -> (i32, i32, i32) {
    %c0_i32 = arith.constant 0 : i32
    %c0_i32_0 = arith.constant 0 : i32
    %c0_i32_1 = arith.constant 0 : i32
    return %arg0, %c0_i32, %c0_i32_0 : i32, i32, i32
  }
  func.func @transform_2(%arg0: i32) -> (i32, i32) {
    %c0_i32 = arith.constant 0 : i32
    %c0_i32_0 = arith.constant 0 : i32
    %c0_i32_1 = arith.constant 0 : i32
    return %c0_i32, %c0_i32_0 : i32, i32
  }
  func.func @transform_3(%arg0: i32) -> (i32, i32) {
    %c0_i32 = arith.constant 0 : i32
    %c0_i32_0 = arith.constant 0 : i32
    %c0_i32_1 = arith.constant 0 : i32
    return %c0_i32, %c0_i32_0 : i32, i32
  }
  func.func @transform_4(%arg0: i32) -> (i32, i32) {
    %c0_i32 = arith.constant 0 : i32
    %c0_i32_0 = arith.constant 0 : i32
    %c0_i32_1 = arith.constant 0 : i32
    return %c0_i32, %c0_i32_0 : i32, i32
  }
  func.func @transform_5(%arg0: i32) -> (i32, i32) {
    %c0_i32 = arith.constant 0 : i32
    %c0_i32_0 = arith.constant 0 : i32
    %c0_i32_1 = arith.constant 0 : i32
    return %c0_i32, %c0_i32_0 : i32, i32
  }
  func.func @transform_6(%arg0: i32) -> (i32, i32) {
    %c0_i32 = arith.constant 0 : i32
    %c0_i32_0 = arith.constant 0 : i32
    %c0_i32_1 = arith.constant 0 : i32
    return %c0_i32, %c0_i32_0 : i32, i32
  }
  func.func @transform_7(%arg0: i32) -> (i32, i32) {
    %c0_i32 = arith.constant 0 : i32
    %c0_i32_0 = arith.constant 0 : i32
    %c0_i32_1 = arith.constant 0 : i32
    return %c0_i32, %c0_i32_0 : i32, i32
  }
  func.func @transform_8(%arg0: i32) -> (i32, i32) {
    %c0_i32 = arith.constant 0 : i32
    %c0_i32_0 = arith.constant 0 : i32
    %c0_i32_1 = arith.constant 0 : i32
    return %c0_i32, %c0_i32_0 : i32, i32
  }
  func.func @transform_9(%arg0: i32) -> (i32, i32) {
    %c0_i32 = arith.constant 0 : i32
    %c0_i32_0 = arith.constant 0 : i32
    %c0_i32_1 = arith.constant 0 : i32
    return %c0_i32, %c0_i32_0 : i32, i32
  }
  func.func @transform_10(%arg0: i32) -> (i32, i32, i32) {
    %c0_i32 = arith.constant 0 : i32
    %c0_i32_0 = arith.constant 0 : i32
    %c0_i32_1 = arith.constant 0 : i32
    return %arg0, %c0_i32, %c0_i32_0 : i32, i32, i32
  }
}

</mosaic_0001>

<bundles_post_ra>
// kernel: tpu_custom_call.1
= control target key start
LH: loop header
LB: loop body
LE: loop exit
PB: predicated region body
PF: predicated region fallthrough
CT: control target
= control target key end

     0   :  { %15 = vsyncpa [#allocation3], 0  ;;  %s2208_s13 = smov 0   ;;  %s3205_s0 = inlined_call_operand.vmem [shape: f32[2], index: 0, kind: input, shape index: {}]   ;;  %s3206_s1 = inlined_call_operand.vmem [shape: f32[2,147,256], index: 1, kind: input, shape index: {}]   ;;  %s3207_s2 = inlined_call_operand.vmem [shape: f32[96,147], index: 2, kind: input, shape index: {}]   ;;  %s3208_s3 = inlined_call_operand.vmem [shape: f32[96,1], index: 3, kind: input, shape index: {}]   ;;  %s3209_s4 = inlined_call_operand.vmem [shape: f32[96,96], index: 4, kind: input, shape index: {}]   ;;  %s3210_s5 = inlined_call_operand.vmem [shape: f32[96,1], index: 5, kind: input, shape index: {}]   ;;  %s3211_s6 = inlined_call_operand.vmem [shape: f32[96,96], index: 6, kind: input, shape index: {}]   ;;  %s3212_s7 = inlined_call_operand.vmem [shape: f32[96,1], index: 7, kind: input, shape index: {}]   ;;  %s3213_s8 = inlined_call_operand.vmem [shape: f32[3,96], index: 8, kind: input, shape index: {}]   ;;  %s3214_s9 = inlined_call_operand.vmem [shape: f32[3,1], index: 9, kind: input, shape index: {}]   ;;  %s3215_s10 = inlined_call_operand.vmem [shape: f32[2,3,256], index: 10, kind: output, shape index: {}]  }
   0x1 LB: > { %s2214_s14 = sadd.s32 4294967295, %s2148_s13   ;;  %p1989_p0 = scmp.ge.s32.totalorder %s2148_s13, 1  ;;  %s2148_s13 = sphi %s2208_s13, %s21_s13  }
   0x2   : > { %p267_p1 = scmp.lt.s32.totalorder %s2148_s13, 3  ;;  %s280_s17 = sshll.u32 %s3205_s0, 4  ;;  %s281_s17 = int_to_ptr.vmem [resolvable:$true] %s280_s17 }
   0x3   : > { %p2096_p3 = scmp.eq.s32.totalorder %s2214_s14, 0  ;;  %s2123_s19 = scalar_lea.vmem %s281_s17, 16 }
   0x4   : > { %p2221_p2 = pnand %p1989_p0, %p267_p1  ;;  %p2124_p6 = scmp.ne.s32.totalorder %s281_s17, %s2123_s19 }
   0x5   : > { %p2131_p10 = scmp.lt.s32.totalorder %s281_s17, %s281_s17  ;;  %p2132_p11 = scmp.lt.s32.totalorder %s2123_s19, %s2123_s19 }
   0x6   : > { %p2092_p4 = pneg %p2221_p2 }
   0x7   : > { %p2133_p12 = por %p2132_p11, %p2131_p10 }
   0x8   : > { %p2093_p5 = pnand %p2096_p3, %p2092_p4 }
   0xa   : > { %p2125_p7 = pneg %p2093_p5 }
   0xc   : > { %p2126_p8 = pnand %p2125_p7, %p2124_p6 }
   0xe   : > { %p2127_p9 = pneg %p2126_p8 }
  0x10   : > { %p2134_p13 = pnand %p2133_p12, %p2127_p9 }
  0x12   : > { %2137 = shalt.err (!%p2134_p13)
}
  0x13   : > { %s2150_s20 = smov [#allocation2]   ;;  %325 = sbr.rel (%p2221_p2) target bundleno = 2141 (0x85d), region = 60 }
  0x14   : > { %2095 = dma.vmem_to_smem (!%p2093_p5), %s281_s17, 16, %s2150_s20, [#allocation3]  }
  0x18   : > { %2143 = dma.done.wait (%p2096_p3), [#allocation3], 16  }
  0x19   : > { %2145 = vsyncadd (%p2096_p3), [#allocation3], 4294967280 }
  0x1a   : > { %331 = sfence }
  0x1b   : > { %p364_p0 = scmp.lt.s32.totalorder %s2214_s14, 1  ;;  %v414_v0 = vld [vmem:[%s3207_s2 + $0x8] sm:$0xff]  ;;  %vm509_vm0 = vcmask 154624   ;;  %v2151_v1 = vmov 0   ;;  %v437_v18 = vld [vmem:[%s3208_s3] sm:$0xff]  ;;  %v439_v20 = vld [vmem:[%s3208_s3 + $0x10] sm:$0xff] }
  0x1c   : > { %1999 = vmatprep.mubr.msk.f32.mxu0 %vm509_vm0, %v414_v0  ;;  %2109 = vset.pattern.permute.xlu0 %v2151_v1  ;;  %v438_v22 = vld [vmem:[%s3208_s3 + $0x8] sm:$0xff]  ;;  %v440_v24 = vld [vmem:[%s3208_s3 + $0x18] sm:$0xff]  ;;  %v441_v28 = vld [vmem:[%s3208_s3 + $0x20] sm:$0xff]  ;;  %vm546_vm1 = vcmask 1042432   ;;  %s2563_s30 = sld [smem:[#allocation2 + %s2214_s14]]  ;;  %vm983_vm4 = vcmask 785408  }
  0x1d   : > { %s2242_s23 = scalar_select %p364_p0, %s2214_s14, 1  ;;  %2110 = vset.pattern.permute.xlu1 %v2151_v1  ;;  %451 = vperm.xlu0 %2109, %v437_v18   ;;  %v442_v30 = vld [vmem:[%s3208_s3 + $0x28] sm:$0xff]  ;;  %v443_v34 = vld [vmem:[%s3208_s3 + $0x30] sm:$0xff]  ;;  %v444_v36 = vld [vmem:[%s3208_s3 + $0x38] sm:$0xff] }
  0x1e   : > { %461 = vperm.xlu1 %2110, %v439_v20   ;;  %v445_v40 = vld [vmem:[%s3208_s3 + $0x40] sm:$0xff]  ;;  %v446_v42 = vld [vmem:[%s3208_s3 + $0x48] sm:$0xff]  ;;  %v447_v46 = vld [vmem:[%s3208_s3 + $0x50] sm:$0xff] }
  0x1f   : > { %s2063_s24 = smul.u32 304, %s2242_s23  ;;  %v448_v48 = vld [vmem:[%s3208_s3 + $0x58] sm:$0xff]  ;;  %v413_v52 = vld [vmem:[%s3207_s2] sm:$0xff]  ;;  %v415_v54 = vld [vmem:[%s3207_s2 + $0x10] sm:$0xff] }
  0x20   : > { %v416_v53 = vld [vmem:[%s3207_s2 + $0x18] sm:$0xff]  ;;  %v418_v55 = vld [vmem:[%s3207_s2 + $0x28] sm:$0xff]  ;;  %v417_v56 = vld [vmem:[%s3207_s2 + $0x20] sm:$0xff] }
  0x21   : > { %s2248_s27 = scalar_lea.vmem %s3206_s1, %s2063_s24  ;;  %456 = vperm.xlu0 %2109, %v438_v22   ;;  %v420_v57 = vld [vmem:[%s3207_s2 + $0x38] sm:$0xff]  ;;  %v419_v58 = vld [vmem:[%s3207_s2 + $0x30] sm:$0xff]  ;;  %v422_v59 = vld [vmem:[%s3207_s2 + $0x48] sm:$0xff] }
  0x22   : > { %v406_v2 = vld [vmem:[%s2248_s27 + $0xf8] sm:$0xff]  ;;  %v405_v3 = vld [vmem:[%s2248_s27 + $0xf0] sm:$0xff]  ;;  %v404_v4 = vld [vmem:[%s2248_s27 + $0xe8] sm:$0xff]  ;;  %466 = vperm.xlu1 %2110, %v440_v24  }
  0x23   : > { %553 = vmatprep.subr.mxu0 %v406_v2  ;;  %v403_v5 = vld [vmem:[%s2248_s27 + $0xe0] sm:$0xff]  ;;  %v402_v6 = vld [vmem:[%s2248_s27 + $0xd8] sm:$0xff]  ;;  %v401_v7 = vld [vmem:[%s2248_s27 + $0xd0] sm:$0xff] }
  0x24   : > { %554 = vmatpush1.msra.mxu0 %v405_v3  ;;  %v400_v8 = vld [vmem:[%s2248_s27 + $0xc8] sm:$0xff]  ;;  %v399_v9 = vld [vmem:[%s2248_s27 + $0xc0] sm:$0xff]  ;;  %v398_v10 = vld [vmem:[%s2248_s27 + $0xb8] sm:$0xff] }
  0x25   : > { %555 = vmatprep.subr.mxu0 %v404_v4  ;;  %v397_v11 = vld [vmem:[%s2248_s27 + $0xb0] sm:$0xff]  ;;  %v396_v12 = vld [vmem:[%s2248_s27 + $0xa8] sm:$0xff]  ;;  %v395_v13 = vld [vmem:[%s2248_s27 + $0xa0] sm:$0xff]  ;;  %471 = vperm.xlu0 %2109, %v441_v28  }
  0x26   : > { %556 = vmatpush1.msra.mxu0 %v403_v5  ;;  %v394_v14 = vld [vmem:[%s2248_s27 + $0x98] sm:$0xff]  ;;  %v393_v15 = vld [vmem:[%s2248_s27 + $0x90] sm:$0xff]  ;;  %v392_v16 = vld [vmem:[%s2248_s27 + $0x88] sm:$0xff]  ;;  %476 = vperm.xlu1 %2110, %v442_v30  }
  0x27   : > { %557 = vmatprep.subr.mxu0 %v402_v6  ;;  %v391_v17 = vld [vmem:[%s2248_s27 + $0x80] sm:$0xff]  ;;  %v390_v19 = vld [vmem:[%s2248_s27 + $0x78] sm:$0xff]  ;;  %v389_v21 = vld [vmem:[%s2248_s27 + $0x70] sm:$0xff] }
  0x28   : > { %558 = vmatpush1.msra.mxu0 %v401_v7  ;;  %v388_v23 = vld [vmem:[%s2248_s27 + $0x68] sm:$0xff]  ;;  %v387_v25 = vld [vmem:[%s2248_s27 + $0x60] sm:$0xff]  ;;  %v386_v26 = vld [vmem:[%s2248_s27 + $0x58] sm:$0xff] }
  0x29   : > { %559 = vmatprep.subr.mxu0 %v400_v8  ;;  %v385_v27 = vld [vmem:[%s2248_s27 + $0x50] sm:$0xff]  ;;  %v384_v29 = vld [vmem:[%s2248_s27 + $0x48] sm:$0xff]  ;;  %v383_v31 = vld [vmem:[%s2248_s27 + $0x40] sm:$0xff]  ;;  %481 = vperm.xlu0 %2109, %v443_v34  }
  0x2a   : > { %560 = vmatpush1.msra.mxu0 %v399_v9  ;;  %v382_v32 = vld [vmem:[%s2248_s27 + $0x38] sm:$0xff]  ;;  %v381_v33 = vld [vmem:[%s2248_s27 + $0x30] sm:$0xff]  ;;  %v380_v35 = vld [vmem:[%s2248_s27 + $0x28] sm:$0xff]  ;;  %486 = vperm.xlu1 %2110, %v444_v36  }
  0x2b   : > { %561 = vmatprep.subr.mxu0 %v398_v10  ;;  %v379_v37 = vld [vmem:[%s2248_s27 + $0x20] sm:$0xff]  ;;  %v378_v38 = vld [vmem:[%s2248_s27 + $0x18] sm:$0xff]  ;;  %v377_v39 = vld [vmem:[%s2248_s27 + $0x10] sm:$0xff] }
  0x2c   : > { %562 = vmatpush1.msra.mxu0 %v397_v11  ;;  %v376_v41 = vld [vmem:[%s2248_s27 + $0x8] sm:$0xff]  ;;  %v375_v43 = vld [vmem:[%s2248_s27] sm:$0xff]  ;;  %v410_v47 = vld [vmem:[%s2248_s27 + $0x118] sm:$0xff] }
  0x2d   : > { %563 = vmatprep.subr.mxu0 %v396_v12  ;;  %v412_v44 = vld [vmem:[%s2248_s27 + $0x128] sm:$0x7]  ;;  %491 = vperm.xlu0 %2109, %v445_v40   ;;  %v411_v45 = vld [vmem:[%s2248_s27 + $0x120] sm:$0x7]  ;;  %v409_v49 = vld [vmem:[%s2248_s27 + $0x110] sm:$0xff] }
  0x2e   : > { %564 = vmatpush1.msra.mxu0 %v395_v13  ;;  %496 = vperm.xlu1 %2110, %v446_v42   ;;  %v408_v50 = vld [vmem:[%s2248_s27 + $0x108] sm:$0xff]  ;;  %v407_v51 = vld [vmem:[%s2248_s27 + $0x100] sm:$0xff]  ;;  %v424_v61 = vld [vmem:[%s3207_s2 + $0x58] sm:$0xff] }
  0x2f   : > { %565 = vmatprep.subr.mxu0 %v394_v14  ;;  %v421_v60 = vld [vmem:[%s3207_s2 + $0x40] sm:$0xff]  ;;  %v423_v62 = vld [vmem:[%s3207_s2 + $0x50] sm:$0xff]  ;;  %v426_v63 = vld [vmem:[%s3207_s2 + $0x68] sm:$0xff] }
  0x30   : > { %566 = vmatpush1.msra.mxu0 %v393_v15  ;;  %v425_v0 = vld [vmem:[%s3207_s2 + $0x60] sm:$0xff]  ;;  %v428_v1 = vld [vmem:[%s3207_s2 + $0x78] sm:$0xff]  ;;  %v427_v2 = vld [vmem:[%s3207_s2 + $0x70] sm:$0xff] }
  0x31   : > { %567 = vmatprep.subr.mxu0 %v392_v16  ;;  %501 = vperm.xlu0 %2109, %v447_v46   ;;  %v430_v3 = vld [vmem:[%s3207_s2 + $0x88] sm:$0xff]  ;;  %v429_v4 = vld [vmem:[%s3207_s2 + $0x80] sm:$0xff]  ;;  %v432_v5 = vld [vmem:[%s3207_s2 + $0x98] sm:$0xff] }
  0x32   : > { %568 = vmatpush1.msra.mxu0 %v391_v17  ;;  %506 = vperm.xlu1 %2110, %v448_v48   ;;  %v431_v6 = vld [vmem:[%s3207_s2 + $0x90] sm:$0xff]  ;;  %v434_v7 = vld [vmem:[%s3207_s2 + $0xa8] sm:$0xff]  ;;  %v433_v8 = vld [vmem:[%s3207_s2 + $0xa0] sm:$0xff] }
  0x33   : > { %569 = vmatprep.subr.mxu0 %v390_v19  ;;  %v436_v9 = vld [vmem:[%s3207_s2 + $0xb8] sm:$0xff]  ;;  %v435_v10 = vld [vmem:[%s3207_s2 + $0xb0] sm:$0xff] }
  0x34   : > { %570 = vmatpush1.msra.mxu0 %v389_v21 }
  0x35   : > { %571 = vmatprep.subr.mxu0 %v388_v23 }
  0x36   : > { %572 = vmatpush1.msra.mxu0 %v387_v25 }
  0x37   : > { %573 = vmatprep.subr.mxu0 %v386_v26 }
  0x38   : > { %574 = vmatpush1.msra.mxu0 %v385_v27 }
  0x39   : > { %575 = vmatprep.subr.mxu0 %v384_v29 }
  0x3a   : > { %576 = vmatpush1.msra.mxu0 %v383_v31 }
  0x3b   : > { %577 = vmatprep.subr.mxu0 %v382_v32 }
  0x3c   : > { %578 = vmatpush1.msra.mxu0 %v381_v33 }
  0x3d   : > { %579 = vmatprep.subr.mxu0 %v380_v35 }
  0x3e   : > { %580 = vmatpush1.msra.mxu0 %v379_v37 }
  0x3f   : > { %581 = vmatprep.subr.mxu0 %v378_v38 }
  0x40   : > { %582 = vmatpush1.msra.mxu0 %v377_v39 }
  0x41   : > { %583 = vmatprep.subr.mxu0 %v376_v41 }
  0x42   : > { %584 = vmatpush1.msra.mxu0 %v375_v43 }
  0x43   : > { %1997 = vmatprep.subr.msk.mxu0 %vm546_vm1, %v412_v44 }
  0x44   : > { %1998 = vmatpush2.msk.msra.mxu0 %vm546_vm1, %v411_v45 }
  0x45   : > { %613 = vmatprep.subr.mxu0 %v410_v47 }
  0x46   : > { %614 = vmatpush2.msra.mxu0 %v409_v49 }
  0x47   : > { %615 = vmatprep.subr.mxu0 %v408_v50 }
  0x48   : > { %616 = vmatpush2.msra.mxu0 %v407_v51 }
  0x49   : > { %618 = vmatmul.mubr.f32.vlgmr.msra.gmra.mxu0 %v413_v52 }
  0x4a   : > { %2000 = vmatprep.mubr.msk.f32.mxu0 %vm509_vm0, %v416_v53 }
  0x4d   : > { %624 = vmatmul.mubr.f32.gmra.mxu0 %v415_v54 }
  0x4e   : > { %2001 = vmatprep.mubr.msk.f32.mxu0 %vm509_vm0, %v418_v55 }
  0x51   : > { %630 = vmatmul.mubr.f32.gmra.mxu0 %v417_v56 }
  0x52   : > { %2002 = vmatprep.mubr.msk.f32.mxu0 %vm509_vm0, %v420_v57 }
  0x55   : > { %636 = vmatmul.mubr.f32.gmra.mxu0 %v419_v58 }
  0x56   : > { %2003 = vmatprep.mubr.msk.f32.mxu0 %vm509_vm0, %v422_v59 }
  0x59   : > { %642 = vmatmul.mubr.f32.gmra.mxu0 %v421_v60 }
  0x5a   : > { %2004 = vmatprep.mubr.msk.f32.mxu0 %vm509_vm0, %v424_v61 }
  0x5d   : > { %648 = vmatmul.mubr.f32.gmra.mxu0 %v423_v62 }
  0x5e   : > { %2005 = vmatprep.mubr.msk.f32.mxu0 %vm509_vm0, %v426_v63 }
  0x61   : > { %654 = vmatmul.mubr.f32.gmra.mxu0 %v425_v0 }
  0x62   : > { %2006 = vmatprep.mubr.msk.f32.mxu0 %vm509_vm0, %v428_v1 }
  0x65   : > { %660 = vmatmul.mubr.f32.gmra.mxu0 %v427_v2 }
  0x66   : > { %2007 = vmatprep.mubr.msk.f32.mxu0 %vm509_vm0, %v430_v3 }
  0x69   : > { %666 = vmatmul.mubr.f32.gmra.mxu0 %v429_v4 }
  0x6a   : > { %2008 = vmatprep.mubr.msk.f32.mxu0 %vm509_vm0, %v432_v5 }
  0x6d   : > { %672 = vmatmul.mubr.f32.gmra.mxu0 %v431_v6 }
  0x6e   : > { %2009 = vmatprep.mubr.msk.f32.mxu0 %vm509_vm0, %v434_v7 }
  0x71   : > { %678 = vmatmul.mubr.f32.gmra.mxu0 %v433_v8 }
  0x72   : > { %2010 = vmatprep.mubr.msk.f32.mxu0 %vm509_vm0, %v436_v9 }
  0x75   : > { %684 = vmatmul.mubr.f32.gmra.mxu0 %v435_v10 }
  0x98   : > { %v452_v11 = vpop.permute.xlu0 %451 }
  0x99   : > { %v462_v22 = vpop.permute.xlu1 %461 }
  0x9c   : > { %v457_v16 = vpop.permute.xlu0 %456 }
  0x9d   : > { %v467_v38 = vpop.permute.xlu1 %466 }
  0xa0   : > { %v472_v49 = vpop.permute.xlu0 %471 }
  0xa1   : > { %v477_v60 = vpop.permute.xlu1 %476 }
  0xa4   : > { %v482_v7 = vpop.permute.xlu0 %481 }
 0x109   : > { %v619_v12 = vpop.f32.mrf.mxu0 }
 0x10a   : > { %v2404_v13 = vadd.f32 %v619_v12, %v452_v11 }
 0x10b   : > { %v621_v14 = vpop.f32.mrf.mxu0 }
 0x10c   : > { %v2406_v15 = vadd.f32 %v621_v14, %v452_v11  ;;  %v722_v18 = vmul.f32 %v2404_v13, %v2404_v13 }
 0x10d   : > { %v625_v17 = vpop.f32.mrf.mxu0 }
 0x10e   : > { %v690_v19 = vadd.f32 %v2406_v15, %v2404_v13  ;;  %v723_v20 = vmul.f32 %v2406_v15, %v2406_v15  ;;  %v2414_v21 = vadd.f32 %v625_v17, %v457_v16 }
 0x10f   : > { %v627_v23 = vpop.f32.mrf.mxu0 }
 0x110   : > { %v746_v24 = vadd.f32 %v723_v20, %v722_v18  ;;  %v691_v25 = vadd.f32 %v690_v19, %v2414_v21  ;;  %v724_v26 = vmul.f32 %v2414_v21, %v2414_v21  ;;  %v2419_v27 = vadd.f32 %v627_v23, %v457_v16  ;;  %v487_v20 = vpop.permute.xlu1 %486 }
 0x111   : > { %v631_v28 = vpop.f32.mrf.mxu0 }
 0x112   : > { %v747_v29 = vadd.f32 %v746_v24, %v724_v26  ;;  %v692_v30 = vadd.f32 %v691_v25, %v2419_v27  ;;  %v725_v31 = vmul.f32 %v2419_v27, %v2419_v27  ;;  %v2424_v32 = vadd.f32 %v631_v28, %v462_v22 }
 0x113   : > { %v633_v33 = vpop.f32.mrf.mxu0 }
 0x114   : > { %v748_v34 = vadd.f32 %v747_v29, %v725_v31  ;;  %v693_v35 = vadd.f32 %v692_v30, %v2424_v32  ;;  %v726_v36 = vmul.f32 %v2424_v32, %v2424_v32  ;;  %v2429_v37 = vadd.f32 %v633_v33, %v462_v22 }
 0x115   : > { %v637_v39 = vpop.f32.mrf.mxu0 }
 0x116   : > { %v749_v40 = vadd.f32 %v748_v34, %v726_v36  ;;  %v694_v41 = vadd.f32 %v693_v35, %v2429_v37  ;;  %v727_v42 = vmul.f32 %v2429_v37, %v2429_v37  ;;  %v2434_v43 = vadd.f32 %v637_v39, %v467_v38  ;;  %v492_v34 = vpop.permute.xlu0 %491 }
 0x117   : > { %v639_v44 = vpop.f32.mrf.mxu0 }
 0x118   : > { %v750_v45 = vadd.f32 %v749_v40, %v727_v42  ;;  %v695_v46 = vadd.f32 %v694_v41, %v2434_v43  ;;  %v728_v47 = vmul.f32 %v2434_v43, %v2434_v43  ;;  %v2439_v48 = vadd.f32 %v639_v44, %v467_v38 }
 0x119   : > { %v643_v50 = vpop.f32.mrf.mxu0 }
 0x11a   : > { %v751_v51 = vadd.f32 %v750_v45, %v728_v47  ;;  %v696_v52 = vadd.f32 %v695_v46, %v2439_v48  ;;  %v729_v53 = vmul.f32 %v2439_v48, %v2439_v48  ;;  %v2444_v54 = vadd.f32 %v643_v50, %v472_v49  ;;  %v497_v47 = vpop.permute.xlu1 %496 }
 0x11b   : > { %v645_v55 = vpop.f32.mrf.mxu0 }
 0x11c   : > { %v752_v56 = vadd.f32 %v751_v51, %v729_v53  ;;  %v697_v57 = vadd.f32 %v696_v52, %v2444_v54  ;;  %v730_v58 = vmul.f32 %v2444_v54, %v2444_v54  ;;  %v2449_v59 = vadd.f32 %v645_v55, %v472_v49 }
 0x11d   : > { %v649_v61 = vpop.f32.mrf.mxu0 }
 0x11e   : > { %v753_v62 = vadd.f32 %v752_v56, %v730_v58  ;;  %v698_v63 = vadd.f32 %v697_v57, %v2449_v59  ;;  %v731_v0 = vmul.f32 %v2449_v59, %v2449_v59  ;;  %v2454_v1 = vadd.f32 %v649_v61, %v477_v60  ;;  %v502_v61 = vpop.permute.xlu0 %501 }
 0x11f   : > { %v651_v2 = vpop.f32.mrf.mxu0 }
 0x120   : > { %v754_v3 = vadd.f32 %v753_v62, %v731_v0  ;;  %v699_v4 = vadd.f32 %v698_v63, %v2454_v1  ;;  %v732_v5 = vmul.f32 %v2454_v1, %v2454_v1  ;;  %v2459_v6 = vadd.f32 %v651_v2, %v477_v60 }
 0x121   : > { %v655_v8 = vpop.f32.mrf.mxu0 }
 0x122   : > { %v755_v9 = vadd.f32 %v754_v3, %v732_v5  ;;  %v700_v10 = vadd.f32 %v699_v4, %v2459_v6  ;;  %v733_v11 = vmul.f32 %v2459_v6, %v2459_v6  ;;  %v2464_v12 = vadd.f32 %v655_v8, %v482_v7 }
 0x123   : > { %v657_v14 = vpop.f32.mrf.mxu0 }
 0x124   : > { %v756_v16 = vadd.f32 %v755_v9, %v733_v11  ;;  %v701_v17 = vadd.f32 %v700_v10, %v2464_v12  ;;  %v734_v18 = vmul.f32 %v2464_v12, %v2464_v12  ;;  %v2469_v19 = vadd.f32 %v657_v14, %v482_v7  ;;  %v507_v10 = vpop.permute.xlu1 %506 }
 0x125   : > { %v661_v22 = vpop.f32.mrf.mxu0 }
 0x126   : > { %v757_v23 = vadd.f32 %v756_v16, %v734_v18  ;;  %v702_v24 = vadd.f32 %v701_v17, %v2469_v19  ;;  %v735_v25 = vmul.f32 %v2469_v19, %v2469_v19  ;;  %v2474_v26 = vadd.f32 %v661_v22, %v487_v20 }
 0x127   : > { %v663_v28 = vpop.f32.mrf.mxu0 }
 0x128   : > { %v758_v29 = vadd.f32 %v757_v23, %v735_v25  ;;  %v703_v30 = vadd.f32 %v702_v24, %v2474_v26  ;;  %v736_v31 = vmul.f32 %v2474_v26, %v2474_v26  ;;  %v2479_v33 = vadd.f32 %v663_v28, %v487_v20 }
 0x129   : > { %v667_v35 = vpop.f32.mrf.mxu0 }
 0x12a   : > { %v759_v36 = vadd.f32 %v758_v29, %v736_v31  ;;  %v704_v38 = vadd.f32 %v703_v30, %v2479_v33  ;;  %v737_v39 = vmul.f32 %v2479_v33, %v2479_v33  ;;  %v2484_v40 = vadd.f32 %v667_v35, %v492_v34  ;;  %v911_v35 = vld [vmem:[%s3210_s5] sm:$0xff] }
 0x12b   : > { %v669_v41 = vpop.f32.mrf.mxu0 }
 0x12c   : > { %v760_v42 = vadd.f32 %v759_v36, %v737_v39  ;;  %v705_v44 = vadd.f32 %v704_v38, %v2484_v40  ;;  %v738_v45 = vmul.f32 %v2484_v40, %v2484_v40  ;;  %v2489_v46 = vadd.f32 %v669_v41, %v492_v34  ;;  %v912_v34 = vld [vmem:[%s3210_s5 + $0x8] sm:$0xff]  ;;  %v914_v36 = vld [vmem:[%s3210_s5 + $0x18] sm:$0xff]  ;;  %v913_v38 = vld [vmem:[%s3210_s5 + $0x10] sm:$0xff] }
 0x12d   : > { %v673_v49 = vpop.f32.mrf.mxu0  ;;  %v916_v39 = vld [vmem:[%s3210_s5 + $0x28] sm:$0xff]  ;;  %v915_v41 = vld [vmem:[%s3210_s5 + $0x20] sm:$0xff] }
 0x12e   : > { %v761_v50 = vadd.f32 %v760_v42, %v738_v45  ;;  %v706_v51 = vadd.f32 %v705_v44, %v2489_v46  ;;  %v739_v52 = vmul.f32 %v2489_v46, %v2489_v46  ;;  %v2494_v53 = vadd.f32 %v673_v49, %v497_v47  ;;  %v918_v42 = vld [vmem:[%s3210_s5 + $0x38] sm:$0xff]  ;;  %v917_v44 = vld [vmem:[%s3210_s5 + $0x30] sm:$0xff]  ;;  %v920_v45 = vld [vmem:[%s3210_s5 + $0x48] sm:$0xff] }
 0x12f   : > { %v675_v55 = vpop.f32.mrf.mxu0  ;;  %v922_v49 = vld [vmem:[%s3210_s5 + $0x58] sm:$0xff] }
 0x130   : > { %v762_v56 = vadd.f32 %v761_v50, %v739_v52  ;;  %v707_v57 = vadd.f32 %v706_v51, %v2494_v53  ;;  %v740_v58 = vmul.f32 %v2494_v53, %v2494_v53  ;;  %v2499_v60 = vadd.f32 %v675_v55, %v497_v47  ;;  %v919_v47 = vld [vmem:[%s3210_s5 + $0x40] sm:$0xff]  ;;  %v921_v50 = vld [vmem:[%s3210_s5 + $0x50] sm:$0xff] }
 0x131   : > { %v679_v62 = vpop.f32.mrf.mxu0 }
 0x132   : > { %v763_v63 = vadd.f32 %v762_v56, %v740_v58  ;;  %v708_v0 = vadd.f32 %v707_v57, %v2499_v60  ;;  %v741_v2 = vmul.f32 %v2499_v60, %v2499_v60  ;;  %v2504_v3 = vadd.f32 %v679_v62, %v502_v61 }
 0x133   : > { %v681_v4 = vpop.f32.mrf.mxu0 }
 0x134   : > { %v764_v5 = vadd.f32 %v763_v63, %v741_v2  ;;  %v709_v7 = vadd.f32 %v708_v0, %v2504_v3  ;;  %v742_v8 = vmul.f32 %v2504_v3, %v2504_v3  ;;  %v2509_v9 = vadd.f32 %v681_v4, %v502_v61 }
 0x135   : > { %v685_v11 = vpop.f32.mrf.mxu0 }
 0x136   : > { %v765_v14 = vadd.f32 %v764_v5, %v742_v8  ;;  %v710_v16 = vadd.f32 %v709_v7, %v2509_v9  ;;  %v743_v17 = vmul.f32 %v2509_v9, %v2509_v9  ;;  %v2514_v18 = vadd.f32 %v685_v11, %v507_v10 }
 0x137   : > { %v687_v20 = vpop.f32.mrf.mxu0 }
 0x138   : > { %v744_v22 = vmul.f32 %v2514_v18, %v2514_v18  ;;  %v2518_v23 = vadd.f32 %v687_v20, %v507_v10  ;;  %v711_v24 = vadd.f32 %v710_v16, %v2514_v18  ;;  %v766_v25 = vadd.f32 %v765_v14, %v743_v17 }
 0x139   : > { %v2152_v20 = vmov 0.0  }
 0x13a   : > { %v712_v28 = vadd.f32 %v711_v24, %v2518_v23  ;;  %v745_v29 = vmul.f32 %v2518_v23, %v2518_v23  ;;  %v767_v30 = vadd.f32 %v766_v25, %v744_v22  ;;  %1084 = vmatprep.mubr.f32.mxu0 %v2152_v20  ;;  %1120 = vmatprep.mubr.f32.mxu1 %v2152_v20 }
 0x13c   : > { %713 = vadd.xlane.f32.xlu0 %v712_v28  ;;  %v768_v31 = vadd.f32 %v767_v30, %v745_v29 }
 0x13e   : > { %769 = vadd.xlane.f32.xlu1 %v768_v31 }
 0x14f   : > { %930 = vperm.xlu1 %2110, %v912_v34  }
 0x152   : > { %925 = vperm.xlu0 %2109, %v911_v35  }
 0x153   : > { %940 = vperm.xlu1 %2110, %v914_v36  }
 0x156   : > { %935 = vperm.xlu0 %2109, %v913_v38  }
 0x157   : > { %950 = vperm.xlu1 %2110, %v916_v39  }
 0x15a   : > { %945 = vperm.xlu0 %2109, %v915_v41  }
 0x15b   : > { %960 = vperm.xlu1 %2110, %v918_v42  }
 0x15e   : > { %955 = vperm.xlu0 %2109, %v917_v44  }
 0x15f   : > { %970 = vperm.xlu1 %2110, %v920_v45  }
 0x162   : > { %965 = vperm.xlu0 %2109, %v919_v47  }
 0x163   : > { %980 = vperm.xlu1 %2110, %v922_v49  }
 0x166   : > { %975 = vperm.xlu0 %2109, %v921_v50  }
 0x1c5   : > { %v714_v51 = vpop.xlane.xlu0 %713 }
 0x1c6   : > { %v715_v52 = vrot.slane %v714_v51, 4 }
 0x1c7   : > { %v770_v55 = vpop.xlane.xlu1 %769 }
 0x1c8   : > { %v716_v56 = vadd.f32 %v715_v52, %v714_v51  ;;  %v771_v57 = vrot.slane %v770_v55, 4 }
 0x1ca   : > { %v717_v58 = vrot.slane %v716_v56, 2  ;;  %v772_v61 = vadd.f32 %v771_v57, %v770_v55 }
 0x1cc   : > { %v773_v62 = vrot.slane %v772_v61, 2  ;;  %v718_v63 = vadd.f32 %v717_v58, %v716_v56 }
 0x1ce   : > { %v719_v0 = vrot.slane %v718_v63, 1  ;;  %v774_v2 = vadd.f32 %v773_v62, %v772_v61 }
 0x1d0   : > { %v720_v4 = vadd.f32 %v719_v0, %v718_v63  ;;  %v775_v5 = vrot.slane %v774_v2, 1 }
 0x1d2   : > { %2064 = vpush %v720_v4  ;;  %v776_v7 = vadd.f32 %v775_v5, %v774_v2 }
 0x1d4   : > { %2066 = vpush %v776_v7 }
 0x203   : > { %s2065_s20 = spop %2064 }
 0x204   : > { %s780_s21 = smul.f32 4.0690105e-05, %s2065_s20 }
 0x205   : > { %s2067_s27 = spop %2066 }
 0x206   : > { %s781_s22 = smul.f32 24576.0, %s780_s21  ;;  %v2565_v25 = vstv %s780_s21 }
 0x207   : > { %v825_v28 = vsub.f32 %v2518_v23, %v2565_v25  ;;  %v824_v29 = vsub.f32 %v2514_v18, %v2565_v25  ;;  %v823_v30 = vsub.f32 %v2509_v9, %v2565_v25  ;;  %v822_v31 = vsub.f32 %v2504_v3, %v2565_v25 }
 0x208   : > { %s782_s24 = smul.f32 %s781_s22, %s780_s21  ;;  %v821_v35 = vsub.f32 %v2499_v60, %v2565_v25  ;;  %v820_v36 = vsub.f32 %v2494_v53, %v2565_v25  ;;  %v819_v23 = vsub.f32 %v2489_v46, %v2565_v25  ;;  %v818_v60 = vsub.f32 %v2484_v40, %v2565_v25 }
 0x209   : > { %v817_v53 = vsub.f32 %v2479_v33, %v2565_v25  ;;  %v816_v50 = vsub.f32 %v2474_v26, %v2565_v25  ;;  %v815_v51 = vsub.f32 %v2469_v19, %v2565_v25  ;;  %v814_v58 = vsub.f32 %v2464_v12, %v2565_v25 }
 0x20a   : > { %s783_s25 = ssub.f32 %s2067_s27, %s782_s24  ;;  %v813_v19 = vsub.f32 %v2459_v6, %v2565_v25  ;;  %v812_v4 = vsub.f32 %v2454_v1, %v2565_v25 }
 0x20c   : > { %s786_s26 = smul.f32 4.069176e-05, %s783_s25 }
 0x20e   : > { %v787_v8 = vstv %s786_s26  ;;  %s2038_s26 = sshll.u32 %s2242_s23, 3 }
 0x20f   : > { %2111 = vrsqrt.f32 %v787_v8  ;;  %vm790_vm2 = vcmp.eq.f32.partialorder %v787_v8, inf  ;;  %v793_v14 = vand.u32 2147483648, %v787_v8  ;;  %vm792_vm3 = vcmp.eq.f32.partialorder %v787_v8, 0.0 }
 0x21c   : > { %v2112_v10 = vpop.eup %2111 }
 0x21d   : > { %v789_v11 = vmul.f32 %v2112_v10, %v787_v8 }
 0x21f   : > { %v791_v16 = vsel %vm790_vm2, %v787_v8, %v789_v11  ;;  %v811_v8 = vsub.f32 %v2449_v59, %v2565_v25 }
 0x220   : > { %v794_v17 = vsel %vm792_vm3, %v793_v14, %v791_v16  ;;  %v810_v14 = vsub.f32 %v2444_v54, %v2565_v25 }
 0x221   : > { %2068 = vpush %v794_v17 }
 0x252   : > { %s2069_s28 = spop %2068 }
 0x253   : > { %s796_s29 = sadd.f32 1e-05, %s2069_s28 }
 0x255   : > { %v797_v22 = vstv %s796_s29 }
 0x256   : > { %2113 = vrcp.f32 %v797_v22  ;;  %v809_v22 = vsub.f32 %v2439_v48, %v2565_v25 }
 0x263   : > { %v2114_v24 = vpop.eup %2113 }
 0x264   : > { %2070 = vpush %v2114_v24 }
 0x295   : > { %s2071_s11 = spop %2070 }
 0x296   : > { %s800_s12 = smul.f32 %s2071_s11, %s2563_s30 }
 0x298   : > { %v2576_v34 = vstv %s800_s12 }
 0x299   : > { %v850_v38 = vmul.f32 %v2576_v34, %v825_v28  ;;  %v849_v18 = vmul.f32 %v2576_v34, %v824_v29  ;;  %v848_v9 = vmul.f32 %v2576_v34, %v823_v30  ;;  %v847_v39 = vmul.f32 %v2576_v34, %v822_v31 }
 0x29a   : > { %v846_v3 = vmul.f32 %v2576_v34, %v821_v35  ;;  %v845_v41 = vmul.f32 %v2576_v34, %v820_v36  ;;  %v844_v45 = vmul.f32 %v2576_v34, %v819_v23  ;;  %v843_v49 = vmul.f32 %v2576_v34, %v818_v60 }
 0x29b   : > { %v874_v42 = vmul.f32 0.01, %v850_v38  ;;  %v873_v46 = vmul.f32 0.01, %v849_v18  ;;  %v872_v44 = vmul.f32 0.01, %v848_v9  ;;  %v842_v56 = vmul.f32 %v2576_v34, %v817_v53 }
 0x29c   : > { %v871_v47 = vmul.f32 0.01, %v847_v39  ;;  %v870_v40 = vmul.f32 0.01, %v846_v3  ;;  %v869_v33 = vmul.f32 0.01, %v845_v41  ;;  %v841_v57 = vmul.f32 %v2576_v34, %v816_v50 }
 0x29d   : > { %v898_v52 = vmax.f32 %v850_v38, %v874_v42  ;;  %v897_v55 = vmax.f32 %v849_v18, %v873_v46  ;;  %v896_v61 = vmax.f32 %v848_v9, %v872_v44  ;;  %v868_v62 = vmul.f32 0.01, %v844_v45 }
 0x29e   : > { %v840_v26 = vmul.f32 %v2576_v34, %v815_v51  ;;  %v895_v63 = vmax.f32 %v847_v39, %v871_v47  ;;  %v867_v0 = vmul.f32 0.01, %v843_v49  ;;  %v839_v2 = vmul.f32 %v2576_v34, %v814_v58 }
 0x29f   : > { %1028 = vmatprep.subr.mxu0 %v898_v52  ;;  %2039 = vmatprep.subr.mxu1 %v898_v52  ;;  %v894_v12 = vmax.f32 %v846_v3, %v870_v40  ;;  %v866_v5 = vmul.f32 0.01, %v842_v56  ;;  %v838_v7 = vmul.f32 %v2576_v34, %v813_v19  ;;  %v893_v6 = vmax.f32 %v845_v41, %v869_v33  ;;  %v899_v19 = vld [vmem:[%s3209_s4] sm:$0xff] }
 0x2a0   : > { %1029 = vmatpush1.msra.mxu0 %v897_v55  ;;  %2051 = vmatpush1.msra.mxu1 %v897_v55  ;;  %v865_v10 = vmul.f32 0.01, %v841_v57  ;;  %v837_v11 = vmul.f32 %v2576_v34, %v812_v4  ;;  %v892_v1 = vmax.f32 %v844_v45, %v868_v62  ;;  %v864_v16 = vmul.f32 0.01, %v840_v26  ;;  %v901_v4 = vld [vmem:[%s3209_s4 + $0x10] sm:$0xff] }
 0x2a1   : > { %1030 = vmatprep.subr.mxu0 %v896_v61  ;;  %2040 = vmatprep.subr.mxu1 %v896_v61  ;;  %v836_v17 = vmul.f32 %v2576_v34, %v811_v8  ;;  %v891_v59 = vmax.f32 %v843_v49, %v867_v0  ;;  %v863_v24 = vmul.f32 0.01, %v839_v2  ;;  %v835_v28 = vmul.f32 %v2576_v34, %v810_v14  ;;  %v900_v0 = vld [vmem:[%s3209_s4 + $0x8] sm:$0xff]  ;;  %v903_v8 = vld [vmem:[%s3209_s4 + $0x20] sm:$0xff]  ;;  %v926_v14 = vpop.permute.xlu0 %925 }
 0x2a2   : > { %1031 = vmatpush1.msra.mxu0 %v895_v63  ;;  %2052 = vmatpush1.msra.mxu1 %v895_v63  ;;  %v808_v29 = vsub.f32 %v2434_v43, %v2565_v25  ;;  %v890_v54 = vmax.f32 %v842_v56, %v866_v5  ;;  %v862_v30 = vmul.f32 0.01, %v838_v7  ;;  %v834_v31 = vmul.f32 %v2576_v34, %v809_v22  ;;  %v905_v63 = vld [vmem:[%s3209_s4 + $0x30] sm:$0xff]  ;;  %v902_v5 = vld [vmem:[%s3209_s4 + $0x18] sm:$0xff] }
 0x2a3   : > { %1032 = vmatprep.subr.mxu0 %v894_v12  ;;  %2041 = vmatprep.subr.mxu1 %v894_v12  ;;  %v807_v35 = vsub.f32 %v2429_v37, %v2565_v25  ;;  %v889_v48 = vmax.f32 %v841_v57, %v865_v10  ;;  %v861_v36 = vmul.f32 0.01, %v837_v11  ;;  %v806_v38 = vsub.f32 %v2424_v32, %v2565_v25  ;;  %v907_v12 = vld [vmem:[%s3209_s4 + $0x40] sm:$0xff]  ;;  %v904_v10 = vld [vmem:[%s3209_s4 + $0x28] sm:$0xff] }
 0x2a4   : > { %1033 = vmatpush1.msra.mxu0 %v893_v6  ;;  %2053 = vmatpush1.msra.mxu1 %v893_v6  ;;  %v833_v23 = vmul.f32 %v2576_v34, %v808_v29  ;;  %v888_v43 = vmax.f32 %v840_v26, %v864_v16  ;;  %v860_v18 = vmul.f32 0.01, %v836_v17  ;;  %v805_v39 = vsub.f32 %v2419_v27, %v2565_v25  ;;  %v909_v6 = vld [vmem:[%s3209_s4 + $0x50] sm:$0xff] }
 0x2a5   : > { %1034 = vmatprep.subr.mxu0 %v892_v1  ;;  %2042 = vmatprep.subr.mxu1 %v892_v1  ;;  %v832_v9 = vmul.f32 %v2576_v34, %v807_v35  ;;  %v887_v37 = vmax.f32 %v839_v2, %v863_v24  ;;  %v859_v3 = vmul.f32 0.01, %v835_v28  ;;  %v831_v41 = vmul.f32 %v2576_v34, %v806_v38  ;;  %v906_v2 = vld [vmem:[%s3209_s4 + $0x38] sm:$0xff] }
 0x2a6   : > { %1035 = vmatpush1.msra.mxu0 %v891_v59  ;;  %2054 = vmatpush1.msra.mxu1 %v891_v59  ;;  %v804_v60 = vsub.f32 %v2414_v21, %v2565_v25  ;;  %v886_v32 = vmax.f32 %v838_v7, %v862_v30  ;;  %v858_v53 = vmul.f32 0.01, %v834_v31  ;;  %v830_v42 = vmul.f32 %v2576_v34, %v805_v39  ;;  %v908_v7 = vld [vmem:[%s3209_s4 + $0x48] sm:$0xff] }
 0x2a7   : > { %1036 = vmatprep.subr.mxu0 %v890_v54  ;;  %2043 = vmatprep.subr.mxu1 %v890_v54  ;;  %v803_v46 = vsub.f32 %v2406_v15, %v2565_v25  ;;  %v885_v27 = vmax.f32 %v837_v11, %v861_v36  ;;  %v857_v44 = vmul.f32 0.01, %v833_v23  ;;  %v802_v47 = vsub.f32 %v2404_v13, %v2565_v25  ;;  %v910_v11 = vld [vmem:[%s3209_s4 + $0x58] sm:$0xff] }
 0x2a8   : > { %1037 = vmatpush1.msra.mxu0 %v889_v48  ;;  %2055 = vmatpush1.msra.mxu1 %v889_v48  ;;  %v829_v45 = vmul.f32 %v2576_v34, %v804_v60  ;;  %v884_v21 = vmax.f32 %v836_v17, %v860_v18  ;;  %v856_v49 = vmul.f32 0.01, %v832_v9  ;;  %v883_v51 = vmax.f32 %v835_v28, %v859_v3  ;;  %v931_v28 = vpop.permute.xlu1 %930 }
 0x2a9   : > { %1038 = vmatprep.subr.mxu0 %v888_v43  ;;  %2044 = vmatprep.subr.mxu1 %v888_v43  ;;  %v828_v50 = vmul.f32 %v2576_v34, %v803_v46  ;;  %v855_v52 = vmul.f32 0.01, %v831_v41  ;;  %v827_v15 = vmul.f32 %v2576_v34, %v802_v47  ;;  %v882_v55 = vmax.f32 %v834_v31, %v858_v53 }
 0x2aa   : > { %1039 = vmatpush1.msra.mxu0 %v887_v37  ;;  %2056 = vmatpush1.msra.mxu1 %v887_v37  ;;  %v854_v40 = vmul.f32 0.01, %v830_v42  ;;  %v881_v56 = vmax.f32 %v833_v23, %v857_v44  ;;  %v853_v13 = vmul.f32 0.01, %v829_v45  ;;  %v880_v25 = vmax.f32 %v832_v9, %v856_v49  ;;  %v936_v9 = vpop.permute.xlu0 %935 }
 0x2ab   : > { %1040 = vmatprep.subr.mxu0 %v886_v32  ;;  %2045 = vmatprep.subr.mxu1 %v886_v32  ;;  %v852_v33 = vmul.f32 0.01, %v828_v50  ;;  %v879_v57 = vmax.f32 %v831_v41, %v855_v52  ;;  %v851_v58 = vmul.f32 0.01, %v827_v15 }
 0x2ac   : > { %1041 = vmatpush1.msra.mxu0 %v885_v27  ;;  %2057 = vmatpush1.msra.mxu1 %v885_v27  ;;  %v878_v61 = vmax.f32 %v830_v42, %v854_v40  ;;  %v877_v34 = vmax.f32 %v829_v45, %v853_v13  ;;  %v941_v45 = vpop.permute.xlu1 %940 }
 0x2ad   : > { %1042 = vmatprep.subr.mxu0 %v884_v21  ;;  %2046 = vmatprep.subr.mxu1 %v884_v21  ;;  %v876_v62 = vmax.f32 %v828_v50, %v852_v33  ;;  %v875_v26 = vmax.f32 %v827_v15, %v851_v58 }
 0x2ae   : > { %1043 = vmatpush1.msra.mxu0 %v883_v51  ;;  %2058 = vmatpush1.msra.mxu1 %v883_v51 }
 0x2af   : > { %1044 = vmatprep.subr.mxu0 %v882_v55  ;;  %2047 = vmatprep.subr.mxu1 %v882_v55  ;;  %v946_v55 = vpop.permute.xlu0 %945 }
 0x2b0   : > { %1045 = vmatpush1.msra.mxu0 %v881_v56  ;;  %2059 = vmatpush1.msra.mxu1 %v881_v56 }
 0x2b1   : > { %1046 = vmatprep.subr.mxu0 %v880_v25  ;;  %2048 = vmatprep.subr.mxu1 %v880_v25 }
 0x2b2   : > { %1047 = vmatpush1.msra.mxu0 %v879_v57  ;;  %2060 = vmatpush1.msra.mxu1 %v879_v57 }
 0x2b3   : > { %1048 = vmatprep.subr.mxu0 %v878_v61  ;;  %2049 = vmatprep.subr.mxu1 %v878_v61 }
 0x2b4   : > { %1049 = vmatpush1.msra.mxu0 %v877_v34  ;;  %2061 = vmatpush1.msra.mxu1 %v877_v34 }
 0x2b5   : > { %1050 = vmatprep.subr.mxu0 %v876_v62  ;;  %2050 = vmatprep.subr.mxu1 %v876_v62 }
 0x2b6   : > { %1051 = vmatpush1.msra.mxu0 %v875_v26  ;;  %2062 = vmatpush1.msra.mxu1 %v875_v26 }
 0x2b7   : > { %2011 = vmatmul.mubr.msk.f32.vlgmr.msra.gmra.mxu0 %vm983_vm4, %v899_v19  ;;  %2017 = vmatmul.mubr.msk.f32.vlgmr.msra.gmra.mxu1 %vm983_vm4, %v905_v63 }
 0x2b8   : > { %1090 = vmatprep.mubr.f32.mxu0 %v2152_v20  ;;  %1126 = vmatprep.mubr.f32.mxu1 %v2152_v20 }
 0x2bb   : > { %2012 = vmatmul.mubr.msk.f32.gmra.mxu0 %vm983_vm4, %v900_v0  ;;  %2018 = vmatmul.mubr.msk.f32.gmra.mxu1 %vm983_vm4, %v906_v2 }
 0x2bc   : > { %1096 = vmatprep.mubr.f32.mxu0 %v2152_v20  ;;  %1132 = vmatprep.mubr.f32.mxu1 %v2152_v20 }
 0x2bf   : > { %2013 = vmatmul.mubr.msk.f32.gmra.mxu0 %vm983_vm4, %v901_v4  ;;  %2019 = vmatmul.mubr.msk.f32.gmra.mxu1 %vm983_vm4, %v907_v12  ;;  %v951_v4 = vpop.permute.xlu1 %950 }
 0x2c0   : > { %1102 = vmatprep.mubr.f32.mxu0 %v2152_v20  ;;  %1138 = vmatprep.mubr.f32.mxu1 %v2152_v20 }
 0x2c3   : > { %2014 = vmatmul.mubr.msk.f32.gmra.mxu0 %vm983_vm4, %v902_v5  ;;  %2020 = vmatmul.mubr.msk.f32.gmra.mxu1 %vm983_vm4, %v908_v7  ;;  %v956_v5 = vpop.permute.xlu0 %955 }
 0x2c4   : > { %1108 = vmatprep.mubr.f32.mxu0 %v2152_v20  ;;  %1144 = vmatprep.mubr.f32.mxu1 %v2152_v20 }
 0x2c7   : > { %2015 = vmatmul.mubr.msk.f32.gmra.mxu0 %vm983_vm4, %v903_v8  ;;  %2021 = vmatmul.mubr.msk.f32.gmra.mxu1 %vm983_vm4, %v909_v6 }
 0x2c8   : > { %1114 = vmatprep.mubr.f32.mxu0 %v2152_v20  ;;  %1150 = vmatprep.mubr.f32.mxu1 %v2152_v20 }
 0x2cb   : > { %2016 = vmatmul.mubr.msk.f32.gmra.mxu0 %vm983_vm4, %v904_v10  ;;  %2022 = vmatmul.mubr.msk.f32.gmra.mxu1 %vm983_vm4, %v910_v11 }
 0x2cc   : > { %1550 = vmatprep.mubr.f32.mxu1 %v2152_v20 }
 0x377   : > { %v1086_v1 = vpop.f32.mrf.mxu0  ;;  %v1122_v16 = vpop.f32.mrf.mxu1 }
 0x378   : > { %v2701_v17 = vadd.f32 %v1086_v1, %v926_v14  ;;  %v2757_v11 = vadd.f32 %v1122_v16, %v956_v5 }
 0x379   : > { %v1088_v22 = vpop.f32.mrf.mxu0  ;;  %v2703_v59 = vpop.f32.mrf.mxu1 }
 0x37a   : > { %v2705_v24 = vadd.f32 %v1088_v22, %v926_v14  ;;  %v1189_v54 = vmul.f32 %v2701_v17, %v2701_v17 }
 0x37b   : > { %v1092_v29 = vpop.f32.mrf.mxu0  ;;  %v2715_v48 = vpop.f32.mrf.mxu1 }
 0x37c   : > { %v1157_v30 = vadd.f32 %v2705_v24, %v2701_v17  ;;  %v1190_v31 = vmul.f32 %v2705_v24, %v2705_v24  ;;  %v2713_v35 = vadd.f32 %v1092_v29, %v931_v28 }
 0x37d   : > { %v1094_v36 = vpop.f32.mrf.mxu0  ;;  %v1130_v32 = vpop.f32.mrf.mxu1 }
 0x37e   : > { %v1213_v23 = vadd.f32 %v1190_v31, %v1189_v54  ;;  %v1158_v38 = vadd.f32 %v1157_v30, %v2713_v35  ;;  %v1191_v43 = vmul.f32 %v2713_v35, %v2713_v35  ;;  %v2720_v18 = vadd.f32 %v1094_v36, %v931_v28 }
 0x37f   : > { %v1098_v39 = vpop.f32.mrf.mxu0  ;;  %v1134_v52 = vpop.f32.mrf.mxu1  ;;  %v2765_v30 = vadd.f32 %v2703_v59, %v956_v5 }
 0x380   : > { %v1214_v37 = vadd.f32 %v1213_v23, %v1191_v43  ;;  %v1159_v3 = vadd.f32 %v1158_v38, %v2720_v18  ;;  %v1192_v41 = vmul.f32 %v2720_v18, %v2720_v18  ;;  %v2725_v60 = vadd.f32 %v1098_v39, %v936_v9  ;;  %v961_v23 = vpop.permute.xlu1 %960 }
 0x381   : > { %v1100_v53 = vpop.f32.mrf.mxu0  ;;  %v1136_v62 = vpop.f32.mrf.mxu1  ;;  %v1201_v43 = vmul.f32 %v2757_v11, %v2757_v11  ;;  %v1202_v59 = vmul.f32 %v2765_v30, %v2765_v30 }
 0x382   : > { %v1215_v42 = vadd.f32 %v1214_v37, %v1192_v41  ;;  %v1160_v46 = vadd.f32 %v1159_v3, %v2725_v60  ;;  %v1193_v27 = vmul.f32 %v2725_v60, %v2725_v60  ;;  %v2730_v44 = vadd.f32 %v1100_v53, %v936_v9 }
 0x383   : > { %v1104_v47 = vpop.f32.mrf.mxu0  ;;  %v1140_v14 = vpop.f32.mrf.mxu1  ;;  %v2773_v9 = vadd.f32 %v2715_v48, %v961_v23  ;;  %v2778_v3 = vadd.f32 %v1130_v32, %v961_v23 }
 0x384   : > { %v1216_v21 = vadd.f32 %v1215_v42, %v1193_v27  ;;  %v1161_v49 = vadd.f32 %v1160_v46, %v2730_v44  ;;  %v1194_v50 = vmul.f32 %v2730_v44, %v2730_v44  ;;  %v2735_v51 = vadd.f32 %v1104_v47, %v941_v45  ;;  %v966_v42 = vpop.permute.xlu0 %965 }
 0x385   : > { %v1106_v15 = vpop.f32.mrf.mxu0  ;;  %v1142_v38 = vpop.f32.mrf.mxu1  ;;  %v1203_v27 = vmul.f32 %v2773_v9, %v2773_v9 }
 0x386   : > { %v1217_v40 = vadd.f32 %v1216_v21, %v1194_v50  ;;  %v1162_v56 = vadd.f32 %v1161_v49, %v2735_v51  ;;  %v1195_v13 = vmul.f32 %v2735_v51, %v2735_v51  ;;  %v2740_v25 = vadd.f32 %v1106_v15, %v941_v45  ;;  %v971_v15 = vpop.permute.xlu1 %970 }
 0x387   : > { %v1110_v33 = vpop.f32.mrf.mxu0  ;;  %v1146_v46 = vpop.f32.mrf.mxu1  ;;  %v2783_v45 = vadd.f32 %v1134_v52, %v966_v42  ;;  %v1204_v21 = vmul.f32 %v2778_v3, %v2778_v3  ;;  %v2788_v49 = vadd.f32 %v1136_v62, %v966_v42  ;;  %v1379_v42 = vld [vmem:[%s3212_s7 + $0x8] sm:$0xff] }
 0x388   : > { %v1218_v57 = vadd.f32 %v1217_v40, %v1195_v13  ;;  %v1163_v58 = vadd.f32 %v1162_v56, %v2740_v25  ;;  %v1196_v61 = vmul.f32 %v2740_v25, %v2740_v25  ;;  %v2745_v34 = vadd.f32 %v1110_v33, %v946_v55  ;;  %v976_v62 = vpop.permute.xlu0 %975 }
 0x389   : > { %v1112_v26 = vpop.f32.mrf.mxu0  ;;  %v1205_v40 = vmul.f32 %v2783_v45, %v2783_v45  ;;  %v2793_v56 = vadd.f32 %v1140_v14, %v971_v15  ;;  %v1206_v33 = vmul.f32 %v2788_v49, %v2788_v49 }
 0x38a   : > { %v1219_v19 = vadd.f32 %v1218_v57, %v1196_v61  ;;  %v1164_v63 = vadd.f32 %v1163_v58, %v2745_v34  ;;  %v1197_v0 = vmul.f32 %v2745_v34, %v2745_v34  ;;  %v2750_v2 = vadd.f32 %v1112_v26, %v946_v55  ;;  %v1148_v55 = vpop.f32.mrf.mxu1 }
 0x38b   : > { %v1116_v12 = vpop.f32.mrf.mxu0  ;;  %v2798_v57 = vadd.f32 %v1142_v38, %v971_v15  ;;  %v2808_v5 = vadd.f32 %v1148_v55, %v976_v62  ;;  %v1387_v15 = vld [vmem:[%s3212_s7 + $0x48] sm:$0xff]  ;;  %v1386_v55 = vld [vmem:[%s3212_s7 + $0x40] sm:$0xff] }
 0x38c   : > { %v1220_v7 = vadd.f32 %v1219_v19, %v1197_v0  ;;  %v1165_v8 = vadd.f32 %v1164_v63, %v2750_v2  ;;  %v1198_v6 = vmul.f32 %v2750_v2, %v2750_v2  ;;  %v2755_v10 = vadd.f32 %v1116_v12, %v951_v4  ;;  %v1152_v26 = vpop.f32.mrf.mxu1 }
 0x38d   : > { %v1118_v1 = vpop.f32.mrf.mxu0  ;;  %v1207_v19 = vmul.f32 %v2793_v56, %v2793_v56  ;;  %v2803_v63 = vadd.f32 %v1146_v46, %v976_v62  ;;  %v1208_v12 = vmul.f32 %v2798_v57, %v2798_v57  ;;  %v1378_v46 = vld [vmem:[%s3212_s7] sm:$0xff] }
 0x38e   : > { %v1221_v22 = vadd.f32 %v1220_v7, %v1198_v6  ;;  %v1166_v28 = vadd.f32 %v1165_v8, %v2755_v10  ;;  %v1199_v29 = vmul.f32 %v2755_v10, %v2755_v10  ;;  %v2762_v54 = vadd.f32 %v1118_v1, %v951_v4  ;;  %v981_v6 = vpop.permute.xlu1 %980  ;;  %v1154_v14 = vpop.f32.mrf.mxu1 }
 0x38f   : > { %v1209_v1 = vmul.f32 %v2803_v63, %v2803_v63 }
 0x390   : > { %v1222_v31 = vadd.f32 %v1221_v22, %v1199_v29  ;;  %v1167_v36 = vadd.f32 %v1166_v28, %v2762_v54  ;;  %v1200_v16 = vmul.f32 %v2762_v54, %v2762_v54  ;;  %v2813_v22 = vadd.f32 %v1152_v26, %v981_v6 }
 0x392   : > { %v1168_v39 = vadd.f32 %v1167_v36, %v2757_v11  ;;  %v1223_v37 = vadd.f32 %v1222_v31, %v1200_v16  ;;  %v1210_v31 = vmul.f32 %v2808_v5, %v2808_v5  ;;  %v2818_v36 = vadd.f32 %v1154_v14, %v981_v6 }
 0x393   : > { %v1211_v38 = vmul.f32 %v2813_v22, %v2813_v22 }
 0x394   : > { %v1169_v41 = vadd.f32 %v1168_v39, %v2765_v30  ;;  %v1224_v53 = vadd.f32 %v1223_v37, %v1201_v43 }
 0x396   : > { %v1170_v48 = vadd.f32 %v1169_v41, %v2773_v9  ;;  %v1225_v47 = vadd.f32 %v1224_v53, %v1202_v59  ;;  %v1212_v59 = vmul.f32 %v2818_v36, %v2818_v36 }
 0x398   : > { %v1171_v32 = vadd.f32 %v1170_v48, %v2778_v3  ;;  %v1226_v50 = vadd.f32 %v1225_v47, %v1203_v27  ;;  %v1381_v27 = vld [vmem:[%s3212_s7 + $0x18] sm:$0xff]  ;;  %v1380_v48 = vld [vmem:[%s3212_s7 + $0x10] sm:$0xff]  ;;  %v1383_v47 = vld [vmem:[%s3212_s7 + $0x28] sm:$0xff] }
 0x39a   : > { %v1172_v52 = vadd.f32 %v1171_v32, %v2783_v45  ;;  %v1227_v13 = vadd.f32 %v1226_v50, %v1204_v21  ;;  %v1382_v21 = vld [vmem:[%s3212_s7 + $0x20] sm:$0xff]  ;;  %v1385_v32 = vld [vmem:[%s3212_s7 + $0x38] sm:$0xff]  ;;  %v1384_v50 = vld [vmem:[%s3212_s7 + $0x30] sm:$0xff] }
 0x39c   : > { %v1173_v58 = vadd.f32 %v1172_v52, %v2788_v49  ;;  %v1228_v61 = vadd.f32 %v1227_v13, %v1205_v40  ;;  %v1389_v40 = vld [vmem:[%s3212_s7 + $0x58] sm:$0xff]  ;;  %v1388_v52 = vld [vmem:[%s3212_s7 + $0x50] sm:$0xff] }
 0x39e   : > { %v1174_v0 = vadd.f32 %v1173_v58, %v2793_v56  ;;  %v1229_v4 = vadd.f32 %v1228_v61, %v1206_v33 }
 0x3a0   : > { %v1175_v7 = vadd.f32 %v1174_v0, %v2798_v57  ;;  %v1230_v8 = vadd.f32 %v1229_v4, %v1207_v19 }
 0x3a2   : > { %v1176_v28 = vadd.f32 %v1175_v7, %v2803_v63  ;;  %v1231_v29 = vadd.f32 %v1230_v8, %v1208_v12 }
 0x3a4   : > { %v1177_v16 = vadd.f32 %v1176_v28, %v2808_v5  ;;  %v1232_v23 = vadd.f32 %v1231_v29, %v1209_v1 }
 0x3a6   : > { %v1178_v43 = vadd.f32 %v1177_v16, %v2813_v22  ;;  %v1233_v39 = vadd.f32 %v1232_v23, %v1210_v31 }
 0x3a8   : > { %v1179_v37 = vadd.f32 %v1178_v43, %v2818_v36  ;;  %v1234_v41 = vadd.f32 %v1233_v39, %v1211_v38 }
 0x3aa   : > { %1180 = vadd.xlane.f32.xlu0 %v1179_v37  ;;  %v1235_v53 = vadd.f32 %v1234_v41, %v1212_v59 }
 0x3ac   : > { %1236 = vadd.xlane.f32.xlu1 %v1235_v53 }
 0x3bd   : > { %1397 = vperm.xlu1 %2110, %v1379_v42  }
 0x3c0   : > { %1392 = vperm.xlu0 %2109, %v1378_v46  }
 0x3c1   : > { %1407 = vperm.xlu1 %2110, %v1381_v27  }
 0x3c4   : > { %1402 = vperm.xlu0 %2109, %v1380_v48  }
 0x3c5   : > { %1417 = vperm.xlu1 %2110, %v1383_v47  }
 0x3c8   : > { %1412 = vperm.xlu0 %2109, %v1382_v21  }
 0x3c9   : > { %1427 = vperm.xlu1 %2110, %v1385_v32  }
 0x3cc   : > { %1422 = vperm.xlu0 %2109, %v1384_v50  }
 0x3cd   : > { %1437 = vperm.xlu1 %2110, %v1387_v15  }
 0x3d0   : > { %1432 = vperm.xlu0 %2109, %v1386_v55  }
 0x3d1   : > { %1447 = vperm.xlu1 %2110, %v1389_v40  }
 0x3d4   : > { %1442 = vperm.xlu0 %2109, %v1388_v52  }
 0x433   : > { %v1181_v13 = vpop.xlane.xlu0 %1180 }
 0x434   : > { %v1182_v33 = vrot.slane %v1181_v13, 4 }
 0x435   : > { %v1237_v58 = vpop.xlane.xlu1 %1236 }
 0x436   : > { %v1183_v61 = vadd.f32 %v1182_v33, %v1181_v13  ;;  %v1238_v62 = vrot.slane %v1237_v58, 4 }
 0x438   : > { %v1184_v26 = vrot.slane %v1183_v61, 2  ;;  %v1239_v19 = vadd.f32 %v1238_v62, %v1237_v58 }
 0x43a   : > { %v1240_v0 = vrot.slane %v1239_v19, 2  ;;  %v1185_v4 = vadd.f32 %v1184_v26, %v1183_v61 }
 0x43c   : > { %v1186_v12 = vrot.slane %v1185_v4, 1  ;;  %v1241_v7 = vadd.f32 %v1240_v0, %v1239_v19 }
 0x43e   : > { %v1187_v8 = vadd.f32 %v1186_v12, %v1185_v4  ;;  %v1242_v6 = vrot.slane %v1241_v7, 1 }
 0x440   : > { %2072 = vpush %v1187_v8  ;;  %v1243_v14 = vadd.f32 %v1242_v6, %v1241_v7 }
 0x442   : > { %2074 = vpush %v1243_v14 }
 0x471   : > { %s2073_s29 = spop %2072 }
 0x472   : > { %s1247_s11 = smul.f32 4.0690105e-05, %s2073_s29 }
 0x473   : > { %s2075_s15 = spop %2074 }
 0x474   : > { %s1248_s12 = smul.f32 24576.0, %s1247_s11  ;;  %v2863_v39 = vstv %s1247_s11 }
 0x475   : > { %v1292_v37 = vsub.f32 %v2818_v36, %v2863_v39  ;;  %v1291_v59 = vsub.f32 %v2813_v22, %v2863_v39  ;;  %v1290_v41 = vsub.f32 %v2808_v5, %v2863_v39  ;;  %v1289_v53 = vsub.f32 %v2803_v63, %v2863_v39 }
 0x476   : > { %s1249_s14 = smul.f32 %s1248_s12, %s1247_s11  ;;  %v1288_v46 = vsub.f32 %v2798_v57, %v2863_v39  ;;  %v1287_v27 = vsub.f32 %v2793_v56, %v2863_v39  ;;  %v1286_v36 = vsub.f32 %v2788_v49, %v2863_v39  ;;  %v1285_v57 = vsub.f32 %v2783_v45, %v2863_v39  ;;  %s373_s11 = scalar_lea.vmem %s3215_s10, %s2038_s26 }
 0x477   : > { %v1284_v56 = vsub.f32 %v2778_v3, %v2863_v39  ;;  %v1283_v52 = vsub.f32 %v2773_v9, %v2863_v39  ;;  %v1282_v13 = vsub.f32 %v2765_v30, %v2863_v39  ;;  %v1281_v26 = vsub.f32 %v2757_v11, %v2863_v39 }
 0x478   : > { %s1250_s16 = ssub.f32 %s2075_s15, %s1249_s14  ;;  %v1280_v9 = vsub.f32 %v2762_v54, %v2863_v39  ;;  %v1279_v8 = vsub.f32 %v2755_v10, %v2863_v39 }
 0x47a   : > { %s1253_s17 = smul.f32 4.069176e-05, %s1250_s16 }
 0x47c   : > { %v1254_v1 = vstv %s1253_s17 }
 0x47d   : > { %2115 = vrsqrt.f32 %v1254_v1  ;;  %vm1257_vm5 = vcmp.eq.f32.partialorder %v1254_v1, inf  ;;  %v1260_v31 = vand.u32 2147483648, %v1254_v1  ;;  %vm1259_vm6 = vcmp.eq.f32.partialorder %v1254_v1, 0.0 }
 0x48a   : > { %v2116_v28 = vpop.eup %2115 }
 0x48b   : > { %v1256_v29 = vmul.f32 %v2116_v28, %v1254_v1 }
 0x48d   : > { %v1258_v16 = vsel %vm1257_vm5, %v1254_v1, %v1256_v29  ;;  %v1278_v1 = vsub.f32 %v2750_v2, %v2863_v39 }
 0x48e   : > { %v1261_v23 = vsel %vm1259_vm6, %v1260_v31, %v1258_v16  ;;  %v1277_v31 = vsub.f32 %v2745_v34, %v2863_v39 }
 0x48f   : > { %2076 = vpush %v1261_v23 }
 0x4c0   : > { %s2077_s18 = spop %2076 }
 0x4c1   : > { %s1263_s19 = sadd.f32 1e-05, %s2077_s18 }
 0x4c3   : > { %v1264_v38 = vstv %s1263_s19 }
 0x4c4   : > { %2117 = vrcp.f32 %v1264_v38  ;;  %v1276_v38 = vsub.f32 %v2740_v25, %v2863_v39 }
 0x4d1   : > { %v2118_v43 = vpop.eup %2117 }
 0x4d2   : > { %2078 = vpush %v2118_v43 }
 0x503   : > { %s2079_s20 = spop %2078 }
 0x504   : > { %s1267_s21 = smul.f32 %s2079_s20, %s2563_s30 }
 0x506   : > { %v2874_v42 = vstv %s1267_s21 }
 0x507   : > { %v1317_v48 = vmul.f32 %v2874_v42, %v1292_v37  ;;  %v1316_v22 = vmul.f32 %v2874_v42, %v1291_v59  ;;  %v1315_v5 = vmul.f32 %v2874_v42, %v1290_v41  ;;  %v1314_v47 = vmul.f32 %v2874_v42, %v1289_v53 }
 0x508   : > { %v1313_v63 = vmul.f32 %v2874_v42, %v1288_v46  ;;  %v1312_v21 = vmul.f32 %v2874_v42, %v1287_v27  ;;  %v1311_v15 = vmul.f32 %v2874_v42, %v1286_v36  ;;  %v1310_v40 = vmul.f32 %v2874_v42, %v1285_v57 }
 0x509   : > { %v1341_v32 = vmul.f32 0.01, %v1317_v48  ;;  %v1340_v49 = vmul.f32 0.01, %v1316_v22  ;;  %v1339_v50 = vmul.f32 0.01, %v1315_v5  ;;  %v1309_v61 = vmul.f32 %v2874_v42, %v1284_v56 }
 0x50a   : > { %v1338_v55 = vmul.f32 0.01, %v1314_v47  ;;  %v1337_v45 = vmul.f32 0.01, %v1313_v63  ;;  %v1336_v3 = vmul.f32 0.01, %v1312_v21  ;;  %v1308_v62 = vmul.f32 %v2874_v42, %v1283_v52 }
 0x50b   : > { %v1365_v33 = vmax.f32 %v1317_v48, %v1341_v32  ;;  %v1364_v58 = vmax.f32 %v1316_v22, %v1340_v49  ;;  %v1363_v19 = vmax.f32 %v1315_v5, %v1339_v50  ;;  %v1335_v0 = vmul.f32 0.01, %v1311_v15 }
 0x50c   : > { %v1307_v4 = vmul.f32 %v2874_v42, %v1282_v13  ;;  %v1362_v30 = vmax.f32 %v1314_v47, %v1338_v55  ;;  %v1334_v12 = vmul.f32 0.01, %v1310_v40  ;;  %v1306_v7 = vmul.f32 %v2874_v42, %v1281_v26 }
 0x50d   : > { %1494 = vmatprep.subr.mxu1 %v1365_v33  ;;  %v1361_v6 = vmax.f32 %v1313_v63, %v1337_v45  ;;  %v1333_v14 = vmul.f32 0.01, %v1309_v61  ;;  %v1305_v11 = vmul.f32 %v2874_v42, %v1280_v9  ;;  %v1360_v28 = vmax.f32 %v1312_v21, %v1336_v3  ;;  %v1366_v9 = vld [vmem:[%s3211_s6] sm:$0xff] }
 0x50e   : > { %1495 = vmatpush1.msra.mxu1 %v1364_v58  ;;  %v1332_v29 = vmul.f32 0.01, %v1308_v62  ;;  %v1304_v54 = vmul.f32 %v2874_v42, %v1279_v8  ;;  %v1359_v16 = vmax.f32 %v1311_v15, %v1335_v0  ;;  %v1331_v23 = vmul.f32 0.01, %v1307_v4  ;;  %v1370_v8 = vld [vmem:[%s3211_s6 + $0x20] sm:$0xff] }
 0x50f   : > { %1496 = vmatprep.subr.mxu1 %v1363_v19  ;;  %v1303_v10 = vmul.f32 %v2874_v42, %v1278_v1  ;;  %v1358_v43 = vmax.f32 %v1310_v40, %v1334_v12  ;;  %v1330_v37 = vmul.f32 0.01, %v1306_v7  ;;  %v1302_v2 = vmul.f32 %v2874_v42, %v1277_v31  ;;  %v1368_v12 = vld [vmem:[%s3211_s6 + $0x10] sm:$0xff]  ;;  %v1374_v1 = vld [vmem:[%s3211_s6 + $0x40] sm:$0xff]  ;;  %v1393_v31 = vpop.permute.xlu0 %1392 }
 0x510   : > { %1497 = vmatpush1.msra.mxu1 %v1362_v30  ;;  %v1275_v59 = vsub.f32 %v2735_v51, %v2863_v39  ;;  %v1357_v41 = vmax.f32 %v1309_v61, %v1333_v14  ;;  %v1329_v53 = vmul.f32 0.01, %v1305_v11  ;;  %v1301_v34 = vmul.f32 %v2874_v42, %v1276_v38  ;;  %v1367_v30 = vld [vmem:[%s3211_s6 + $0x8] sm:$0xff]  ;;  %v1372_v14 = vld [vmem:[%s3211_s6 + $0x30] sm:$0xff] }
 0x511   : > { %1498 = vmatprep.subr.mxu1 %v1361_v6  ;;  %v1274_v46 = vsub.f32 %v2730_v44, %v2863_v39  ;;  %v1356_v27 = vmax.f32 %v1308_v62, %v1332_v29  ;;  %v1328_v36 = vmul.f32 0.01, %v1304_v54  ;;  %v1273_v48 = vsub.f32 %v2725_v60, %v2863_v39  ;;  %v1371_v6 = vld [vmem:[%s3211_s6 + $0x28] sm:$0xff]  ;;  %v1376_v29 = vld [vmem:[%s3211_s6 + $0x50] sm:$0xff] }
 0x512   : > { %1499 = vmatpush1.msra.mxu1 %v1360_v28  ;;  %v1300_v25 = vmul.f32 %v2874_v42, %v1275_v59  ;;  %v1355_v22 = vmax.f32 %v1307_v4, %v1331_v23  ;;  %v1327_v5 = vmul.f32 0.01, %v1303_v10  ;;  %v1272_v47 = vsub.f32 %v2720_v18, %v2863_v39  ;;  %v1375_v28 = vld [vmem:[%s3211_s6 + $0x48] sm:$0xff] }
 0x513   : > { %1500 = vmatprep.subr.mxu1 %v1359_v16  ;;  %v1299_v51 = vmul.f32 %v2874_v42, %v1274_v46  ;;  %v1354_v63 = vmax.f32 %v1306_v7, %v1330_v37  ;;  %v1326_v21 = vmul.f32 0.01, %v1302_v2  ;;  %v1298_v44 = vmul.f32 %v2874_v42, %v1273_v48  ;;  %v1369_v7 = vld [vmem:[%s3211_s6 + $0x18] sm:$0xff] }
 0x514   : > { %1501 = vmatpush1.msra.mxu1 %v1358_v43  ;;  %v1271_v57 = vsub.f32 %v2713_v35, %v2863_v39  ;;  %v1353_v56 = vmax.f32 %v1305_v11, %v1329_v53  ;;  %v1325_v32 = vmul.f32 0.01, %v1301_v34  ;;  %v1297_v60 = vmul.f32 %v2874_v42, %v1272_v47  ;;  %v1373_v11 = vld [vmem:[%s3211_s6 + $0x38] sm:$0xff]  ;;  %v1398_v43 = vpop.permute.xlu1 %1397 }
 0x515   : > { %1502 = vmatprep.subr.mxu1 %v1357_v41  ;;  %v1270_v49 = vsub.f32 %v2705_v24, %v2863_v39  ;;  %v1352_v50 = vmax.f32 %v1304_v54, %v1328_v36  ;;  %v1324_v15 = vmul.f32 0.01, %v1300_v25  ;;  %v1269_v55 = vsub.f32 %v2701_v17, %v2863_v39  ;;  %v1377_v54 = vld [vmem:[%s3211_s6 + $0x58] sm:$0xff] }
 0x516   : > { %1503 = vmatpush1.msra.mxu1 %v1356_v27  ;;  %v1296_v18 = vmul.f32 %v2874_v42, %v1271_v57  ;;  %v1351_v40 = vmax.f32 %v1303_v10, %v1327_v5  ;;  %v1323_v52 = vmul.f32 0.01, %v1299_v51  ;;  %v1350_v13 = vmax.f32 %v1302_v2, %v1326_v21 }
 0x517   : > { %1504 = vmatprep.subr.mxu1 %v1355_v22  ;;  %v1295_v35 = vmul.f32 %v2874_v42, %v1270_v49  ;;  %v1322_v33 = vmul.f32 0.01, %v1298_v44  ;;  %v1294_v58 = vmul.f32 %v2874_v42, %v1269_v55  ;;  %v1349_v24 = vmax.f32 %v1301_v34, %v1325_v32 }
 0x518   : > { %1505 = vmatpush1.msra.mxu1 %v1354_v63  ;;  %v1321_v45 = vmul.f32 0.01, %v1297_v60  ;;  %v1348_v61 = vmax.f32 %v1300_v25, %v1324_v15  ;;  %v1320_v3 = vmul.f32 0.01, %v1296_v18  ;;  %v1347_v62 = vmax.f32 %v1299_v51, %v1323_v52  ;;  %v1403_v25 = vpop.permute.xlu0 %1402  ;;  %v1408_v32 = vpop.permute.xlu1 %1407 }
 0x519   : > { %1506 = vmatprep.subr.mxu1 %v1353_v56  ;;  %v1319_v26 = vmul.f32 0.01, %v1295_v35  ;;  %v1346_v17 = vmax.f32 %v1298_v44, %v1322_v33  ;;  %v1318_v39 = vmul.f32 0.01, %v1294_v58 }
 0x51a   : > { %1507 = vmatpush1.msra.mxu1 %v1352_v50  ;;  %v1345_v19 = vmax.f32 %v1297_v60, %v1321_v45  ;;  %v1344_v0 = vmax.f32 %v1296_v18, %v1320_v3 }
 0x51b   : > { %1508 = vmatprep.subr.mxu1 %v1351_v40  ;;  %v1343_v4 = vmax.f32 %v1295_v35, %v1319_v26  ;;  %v1342_v42 = vmax.f32 %v1294_v58, %v1318_v39 }
 0x51c   : > { %1509 = vmatpush1.msra.mxu1 %v1350_v13  ;;  %v1413_v33 = vpop.permute.xlu0 %1412 }
 0x51d   : > { %1510 = vmatprep.subr.mxu1 %v1349_v24 }
 0x51e   : > { %1511 = vmatpush1.msra.mxu1 %v1348_v61 }
 0x51f   : > { %1512 = vmatprep.subr.mxu1 %v1347_v62 }
 0x520   : > { %1513 = vmatpush1.msra.mxu1 %v1346_v17 }
 0x521   : > { %1514 = vmatprep.subr.mxu1 %v1345_v19 }
 0x522   : > { %1515 = vmatpush1.msra.mxu1 %v1344_v0  ;;  %v1418_v0 = vpop.permute.xlu1 %1417 }
 0x523   : > { %1516 = vmatprep.subr.mxu1 %v1343_v4 }
 0x524   : > { %1517 = vmatpush1.msra.mxu1 %v1342_v42 }
 0x525   : > { %2023 = vmatmul.mubr.msk.f32.vlgmr.msra.gmra.mxu1 %vm983_vm4, %v1366_v9 }
 0x526   : > { %1556 = vmatprep.mubr.f32.mxu1 %v2152_v20 }
 0x529   : > { %2024 = vmatmul.mubr.msk.f32.gmra.mxu1 %vm983_vm4, %v1367_v30 }
 0x52a   : > { %1562 = vmatprep.mubr.f32.mxu1 %v2152_v20 }
 0x52d   : > { %2025 = vmatmul.mubr.msk.f32.gmra.mxu1 %vm983_vm4, %v1368_v12 }
 0x52e   : > { %1568 = vmatprep.mubr.f32.mxu1 %v2152_v20 }
 0x531   : > { %2026 = vmatmul.mubr.msk.f32.gmra.mxu1 %vm983_vm4, %v1369_v7 }
 0x532   : > { %1574 = vmatprep.mubr.f32.mxu1 %v2152_v20 }
 0x535   : > { %2027 = vmatmul.mubr.msk.f32.gmra.mxu1 %vm983_vm4, %v1370_v8 }
 0x536   : > { %1580 = vmatprep.mubr.f32.mxu1 %v2152_v20 }
 0x539   : > { %2028 = vmatmul.mubr.msk.f32.gmra.mxu1 %vm983_vm4, %v1371_v6 }
 0x53a   : > { %1586 = vmatprep.mubr.f32.mxu1 %v2152_v20 }
 0x53d   : > { %2029 = vmatmul.mubr.msk.f32.gmra.mxu1 %vm983_vm4, %v1372_v14 }
 0x53e   : > { %1592 = vmatprep.mubr.f32.mxu1 %v2152_v20 }
 0x541   : > { %2030 = vmatmul.mubr.msk.f32.gmra.mxu1 %vm983_vm4, %v1373_v11 }
 0x542   : > { %1598 = vmatprep.mubr.f32.mxu1 %v2152_v20 }
 0x545   : > { %2031 = vmatmul.mubr.msk.f32.gmra.mxu1 %vm983_vm4, %v1374_v1  ;;  %v1423_v1 = vpop.permute.xlu0 %1422 }
 0x546   : > { %1604 = vmatprep.mubr.f32.mxu1 %v2152_v20 }
 0x549   : > { %2032 = vmatmul.mubr.msk.f32.gmra.mxu1 %vm983_vm4, %v1375_v28 }
 0x54a   : > { %1610 = vmatprep.mubr.f32.mxu1 %v2152_v20 }
 0x54d   : > { %2033 = vmatmul.mubr.msk.f32.gmra.mxu1 %vm983_vm4, %v1376_v29 }
 0x54e   : > { %1616 = vmatprep.mubr.f32.mxu1 %v2152_v20 }
 0x551   : > { %2034 = vmatmul.mubr.msk.f32.gmra.mxu1 %vm983_vm4, %v1377_v54 }
 0x552   : > { %1906 = vmatprep.mubr.f32.mxu1 %v2152_v20 }
 0x5e5   : > { %v1552_v16 = vpop.f32.mrf.mxu1 }
 0x5e6   : > { %v3000_v23 = vadd.f32 %v1552_v16, %v1393_v31 }
 0x5e7   : > { %v1554_v10 = vpop.f32.mrf.mxu1 }
 0x5e8   : > { %v3002_v38 = vadd.f32 %v1554_v10, %v1393_v31  ;;  %v1655_v2 = vmul.f32 %v3000_v23, %v3000_v23 }
 0x5e9   : > { %v1558_v37 = vpop.f32.mrf.mxu1 }
 0x5ea   : > { %v1623_v59 = vadd.f32 %v3002_v38, %v3000_v23  ;;  %v1656_v41 = vmul.f32 %v3002_v38, %v3002_v38  ;;  %v3010_v53 = vadd.f32 %v1558_v37, %v1398_v43 }
 0x5eb   : > { %v1560_v20 = vpop.f32.mrf.mxu1 }
 0x5ec   : > { %v1679_v34 = vadd.f32 %v1656_v41, %v1655_v2  ;;  %v1624_v46 = vadd.f32 %v1623_v59, %v3010_v53  ;;  %v1657_v27 = vmul.f32 %v3010_v53, %v3010_v53  ;;  %v3015_v36 = vadd.f32 %v1560_v20, %v1398_v43  ;;  %v1428_v41 = vpop.permute.xlu1 %1427 }
 0x5ed   : > { %v1564_v48 = vpop.f32.mrf.mxu1 }
 0x5ee   : > { %v1680_v22 = vadd.f32 %v1679_v34, %v1657_v27  ;;  %v1625_v5 = vadd.f32 %v1624_v46, %v3015_v36  ;;  %v1658_v51 = vmul.f32 %v3015_v36, %v3015_v36  ;;  %v3020_v47 = vadd.f32 %v1564_v48, %v1403_v25 }
 0x5ef   : > { %v1566_v63 = vpop.f32.mrf.mxu1 }
 0x5f0   : > { %v1681_v21 = vadd.f32 %v1680_v22, %v1658_v51  ;;  %v1626_v44 = vadd.f32 %v1625_v5, %v3020_v47  ;;  %v1659_v57 = vmul.f32 %v3020_v47, %v3020_v47  ;;  %v3025_v56 = vadd.f32 %v1566_v63, %v1403_v25 }
 0x5f1   : > { %v1570_v60 = vpop.f32.mrf.mxu1 }
 0x5f2   : > { %v1682_v49 = vadd.f32 %v1681_v21, %v1659_v57  ;;  %v1627_v50 = vadd.f32 %v1626_v44, %v3025_v56  ;;  %v1660_v15 = vmul.f32 %v3025_v56, %v3025_v56  ;;  %v3030_v18 = vadd.f32 %v1570_v60, %v1408_v32  ;;  %v1433_v21 = vpop.permute.xlu0 %1432 }
 0x5f3   : > { %v1572_v55 = vpop.f32.mrf.mxu1 }
 0x5f4   : > { %v1683_v40 = vadd.f32 %v1682_v49, %v1660_v15  ;;  %v1628_v52 = vadd.f32 %v1627_v50, %v3030_v18  ;;  %v1661_v35 = vmul.f32 %v3030_v18, %v3030_v18  ;;  %v3035_v13 = vadd.f32 %v1572_v55, %v1408_v32 }
 0x5f5   : > { %v1576_v58 = vpop.f32.mrf.mxu1 }
 0x5f6   : > { %v1684_v24 = vadd.f32 %v1683_v40, %v1661_v35  ;;  %v1629_v45 = vadd.f32 %v1628_v52, %v3035_v13  ;;  %v1662_v61 = vmul.f32 %v3035_v13, %v3035_v13  ;;  %v3040_v3 = vadd.f32 %v1576_v58, %v1413_v33  ;;  %v1438_v35 = vpop.permute.xlu1 %1437 }
 0x5f7   : > { %v1578_v62 = vpop.f32.mrf.mxu1 }
 0x5f8   : > { %v1685_v26 = vadd.f32 %v1684_v24, %v1662_v61  ;;  %v1630_v17 = vadd.f32 %v1629_v45, %v3040_v3  ;;  %v1663_v39 = vmul.f32 %v3040_v3, %v3040_v3  ;;  %v3045_v19 = vadd.f32 %v1578_v62, %v1413_v33 }
 0x5f9   : > { %v1582_v4 = vpop.f32.mrf.mxu1 }
 0x5fa   : > { %v1686_v42 = vadd.f32 %v1685_v26, %v1663_v39  ;;  %v1631_v9 = vadd.f32 %v1630_v17, %v3045_v19  ;;  %v1664_v30 = vmul.f32 %v3045_v19, %v3045_v19  ;;  %v3050_v12 = vadd.f32 %v1582_v4, %v1418_v0  ;;  %v1443_v4 = vpop.permute.xlu0 %1442 }
 0x5fb   : > { %v1584_v7 = vpop.f32.mrf.mxu1 }
 0x5fc   : > { %v1687_v8 = vadd.f32 %v1686_v42, %v1664_v30  ;;  %v1632_v6 = vadd.f32 %v1631_v9, %v3050_v12  ;;  %v1665_v14 = vmul.f32 %v3050_v12, %v3050_v12  ;;  %v3055_v11 = vadd.f32 %v1584_v7, %v1418_v0 }
 0x5fd   : > { %v1588_v28 = vpop.f32.mrf.mxu1 }
 0x5fe   : > { %v1688_v29 = vadd.f32 %v1687_v8, %v1665_v14  ;;  %v1633_v54 = vadd.f32 %v1632_v6, %v3055_v11  ;;  %v1666_v31 = vmul.f32 %v3055_v11, %v3055_v11  ;;  %v3060_v16 = vadd.f32 %v1588_v28, %v1423_v1 }
 0x5ff   : > { %v1590_v10 = vpop.f32.mrf.mxu1 }
 0x600   : > { %v1689_v43 = vadd.f32 %v1688_v29, %v1666_v31  ;;  %v1634_v37 = vadd.f32 %v1633_v54, %v3060_v16  ;;  %v1667_v2 = vmul.f32 %v3060_v16, %v3060_v16  ;;  %v3065_v59 = vadd.f32 %v1590_v10, %v1423_v1  ;;  %v1448_v54 = vpop.permute.xlu1 %1447 }
 0x601   : > { %v1594_v20 = vpop.f32.mrf.mxu1 }
 0x602   : > { %v1690_v34 = vadd.f32 %v1689_v43, %v1667_v2  ;;  %v1635_v46 = vadd.f32 %v1634_v37, %v3065_v59  ;;  %v1668_v27 = vmul.f32 %v3065_v59, %v3065_v59  ;;  %v3070_v25 = vadd.f32 %v1594_v20, %v1428_v41 }
 0x603   : > { %v1596_v48 = vpop.f32.mrf.mxu1 }
 0x604   : > { %v1691_v22 = vadd.f32 %v1690_v34, %v1668_v27  ;;  %v1636_v5 = vadd.f32 %v1635_v46, %v3070_v25  ;;  %v1669_v51 = vmul.f32 %v3070_v25, %v3070_v25  ;;  %v3075_v63 = vadd.f32 %v1596_v48, %v1428_v41 }
 0x605   : > { %v1600_v44 = vpop.f32.mrf.mxu1 }
 0x606   : > { %v1692_v57 = vadd.f32 %v1691_v22, %v1669_v51  ;;  %v1637_v32 = vadd.f32 %v1636_v5, %v3075_v63  ;;  %v1670_v60 = vmul.f32 %v3075_v63, %v3075_v63  ;;  %v3080_v49 = vadd.f32 %v1600_v44, %v1433_v21 }
 0x607   : > { %v1602_v50 = vpop.f32.mrf.mxu1 }
 0x608   : > { %v1693_v15 = vadd.f32 %v1692_v57, %v1670_v60  ;;  %v1638_v55 = vadd.f32 %v1637_v32, %v3080_v49  ;;  %v1671_v40 = vmul.f32 %v3080_v49, %v3080_v49  ;;  %v3085_v52 = vadd.f32 %v1602_v50, %v1433_v21  ;;  %v1833_v21 = vld [vmem:[%s3214_s9] sm:$0x7] }
 0x609   : > { %v1606_v33 = vpop.f32.mrf.mxu1 }
 0x60a   : > { %v1694_v58 = vadd.f32 %v1693_v15, %v1671_v40  ;;  %v1639_v24 = vadd.f32 %v1638_v55, %v3085_v52  ;;  %v1672_v45 = vmul.f32 %v3085_v52, %v3085_v52  ;;  %v3090_v61 = vadd.f32 %v1606_v33, %v1438_v35 }
 0x60b   : > { %v1608_v62 = vpop.f32.mrf.mxu1 }
 0x60c   : > { %v1695_v26 = vadd.f32 %v1694_v58, %v1672_v45  ;;  %v1640_v17 = vadd.f32 %v1639_v24, %v3090_v61  ;;  %v1673_v39 = vmul.f32 %v3090_v61, %v3090_v61  ;;  %v3095_v0 = vadd.f32 %v1608_v62, %v1438_v35 }
 0x60d   : > { %v1612_v42 = vpop.f32.mrf.mxu1 }
 0x60e   : > { %v1696_v9 = vadd.f32 %v1695_v26, %v1673_v39  ;;  %v1641_v30 = vadd.f32 %v1640_v17, %v3095_v0  ;;  %v1674_v7 = vmul.f32 %v3095_v0, %v3095_v0  ;;  %v3100_v8 = vadd.f32 %v1612_v42, %v1443_v4 }
 0x60f   : > { %v1614_v6 = vpop.f32.mrf.mxu1 }
 0x610   : > { %v1697_v14 = vadd.f32 %v1696_v9, %v1674_v7  ;;  %v1642_v1 = vadd.f32 %v1641_v30, %v3100_v8  ;;  %v1675_v28 = vmul.f32 %v3100_v8, %v3100_v8  ;;  %v3105_v29 = vadd.f32 %v1614_v6, %v1443_v4 }
 0x611   : > { %v1618_v31 = vpop.f32.mrf.mxu1 }
 0x612   : > { %v1698_v10 = vadd.f32 %v1697_v14, %v1675_v28  ;;  %v1643_v43 = vadd.f32 %v1642_v1, %v3105_v29  ;;  %v1676_v37 = vmul.f32 %v3105_v29, %v3105_v29  ;;  %v3110_v2 = vadd.f32 %v1618_v31, %v1448_v54 }
 0x613   : > { %v1620_v41 = vpop.f32.mrf.mxu1 }
 0x614   : > { %v1677_v20 = vmul.f32 %v3110_v2, %v3110_v2  ;;  %v1621_v34 = vadd.f32 %v1620_v41, %v1448_v54  ;;  %v1644_v46 = vadd.f32 %v1643_v43, %v3110_v2  ;;  %v1699_v27 = vadd.f32 %v1698_v10, %v1676_v37 }
 0x616   : > { %v1645_v48 = vadd.f32 %v1644_v46, %v1621_v34  ;;  %v1678_v22 = vmul.f32 %v1621_v34, %v1621_v34  ;;  %v1700_v5 = vadd.f32 %v1699_v27, %v1677_v20 }
 0x618   : > { %1646 = vadd.xlane.f32.xlu0 %v1645_v48  ;;  %v1701_v51 = vadd.f32 %v1700_v5, %v1678_v22 }
 0x61a   : > { %1702 = vadd.xlane.f32.xlu1 %v1701_v51 }
 0x62e   : > { %1836 = vperm.xlu0 %2109, %v1833_v21  }
 0x6a1   : > { %v1647_v44 = vpop.xlane.xlu0 %1646 }
 0x6a2   : > { %v1648_v57 = vrot.slane %v1647_v44, 4 }
 0x6a3   : > { %v1703_v32 = vpop.xlane.xlu1 %1702 }
 0x6a4   : > { %v1649_v60 = vadd.f32 %v1648_v57, %v1647_v44  ;;  %v1704_v50 = vrot.slane %v1703_v32, 4 }
 0x6a6   : > { %v1650_v15 = vrot.slane %v1649_v60, 2  ;;  %v1705_v55 = vadd.f32 %v1704_v50, %v1703_v32 }
 0x6a8   : > { %v1706_v40 = vrot.slane %v1705_v55, 2  ;;  %v1651_v35 = vadd.f32 %v1650_v15, %v1649_v60 }
 0x6aa   : > { %v1707_v33 = vadd.f32 %v1706_v40, %v1705_v55  ;;  %v1652_v58 = vrot.slane %v1651_v35, 1 }
 0x6ac   : > { %v1653_v24 = vadd.f32 %v1652_v58, %v1651_v35  ;;  %v1708_v45 = vrot.slane %v1707_v33, 1 }
 0x6ae   : > { %2080 = vpush %v1653_v24  ;;  %v1709_v62 = vadd.f32 %v1708_v45, %v1707_v33 }
 0x6b0   : > { %2082 = vpush %v1709_v62 }
 0x6df   : > { %s2081_s14 = spop %2080 }
 0x6e0   : > { %s1713_s15 = smul.f32 4.0690105e-05, %s2081_s14 }
 0x6e1   : > { %s2083_s18 = spop %2082 }
 0x6e2   : > { %s1714_s16 = smul.f32 24576.0, %s1713_s15  ;;  %v3118_v6 = vstv %s1713_s15 }
 0x6e3   : > { %v1758_v14 = vsub.f32 %v1621_v34, %v3118_v6  ;;  %v1757_v1 = vsub.f32 %v3110_v2, %v3118_v6  ;;  %v1756_v28 = vsub.f32 %v3105_v29, %v3118_v6  ;;  %v1755_v54 = vsub.f32 %v3100_v8, %v3118_v6 }
 0x6e4   : > { %s1715_s17 = smul.f32 %s1714_s16, %s1713_s15  ;;  %v1754_v10 = vsub.f32 %v3095_v0, %v3118_v6  ;;  %v1753_v43 = vsub.f32 %v3090_v61, %v3118_v6  ;;  %v1752_v37 = vsub.f32 %v3085_v52, %v3118_v6  ;;  %v1751_v0 = vsub.f32 %v3080_v49, %v3118_v6 }
 0x6e5   : > { %v1750_v61 = vsub.f32 %v3075_v63, %v3118_v6  ;;  %v1749_v51 = vsub.f32 %v3070_v25, %v3118_v6  ;;  %v1748_v21 = vsub.f32 %v3065_v59, %v3118_v6  ;;  %v1747_v50 = vsub.f32 %v3060_v16, %v3118_v6 }
 0x6e6   : > { %s1716_s19 = ssub.f32 %s2083_s18, %s1715_s17  ;;  %v1746_v25 = vsub.f32 %v3055_v11, %v3118_v6  ;;  %v1745_v58 = vsub.f32 %v3050_v12, %v3118_v6  ;;  %v1744_v62 = vsub.f32 %v3045_v19, %v3118_v6 }
 0x6e8   : > { %s1719_s20 = smul.f32 4.069176e-05, %s1716_s19 }
 0x6ea   : > { %v1720_v26 = vstv %s1719_s20 }
 0x6eb   : > { %2119 = vrsqrt.f32 %v1720_v26  ;;  %vm1723_vm7 = vcmp.eq.f32.partialorder %v1720_v26, inf  ;;  %v1726_v4 = vand.u32 2147483648, %v1720_v26  ;;  %vm1725_vm8 = vcmp.eq.f32.partialorder %v1720_v26, 0.0 }
 0x6f8   : > { %v2120_v17 = vpop.eup %2119 }
 0x6f9   : > { %v1722_v39 = vmul.f32 %v2120_v17, %v1720_v26 }
 0x6fb   : > { %v1724_v42 = vsel %vm1723_vm7, %v1720_v26, %v1722_v39  ;;  %v1743_v39 = vsub.f32 %v3040_v3, %v3118_v6 }
 0x6fc   : > { %v1727_v9 = vsel %vm1725_vm8, %v1726_v4, %v1724_v42 }
 0x6fd   : > { %2084 = vpush %v1727_v9  ;;  %v1742_v9 = vsub.f32 %v3035_v13, %v3118_v6 }
 0x72e   : > { %s2085_s21 = spop %2084 }
 0x72f   : > { %s1729_s22 = sadd.f32 1e-05, %s2085_s21 }
 0x731   : > { %v1730_v30 = vstv %s1729_s22 }
 0x732   : > { %2121 = vrcp.f32 %v1730_v30 }
 0x73f   : > { %v2122_v7 = vpop.eup %2121 }
 0x740   : > { %2086 = vpush %v2122_v7 }
 0x771   : > { %s2087_s24 = spop %2086 }
 0x772   : > { %s1733_s27 = smul.f32 %s2087_s24, %s2563_s30 }
 0x774   : > { %v3128_v31 = vstv %s1733_s27 }
 0x775   : > { %v1783_v41 = vmul.f32 %v3128_v31, %v1758_v14  ;;  %v1782_v2 = vmul.f32 %v3128_v31, %v1757_v1  ;;  %v1781_v29 = vmul.f32 %v3128_v31, %v1756_v28  ;;  %v1780_v20 = vmul.f32 %v3128_v31, %v1755_v54 }
 0x776   : > { %v1779_v8 = vmul.f32 %v3128_v31, %v1754_v10  ;;  %v1778_v34 = vmul.f32 %v3128_v31, %v1753_v43  ;;  %v1777_v48 = vmul.f32 %v3128_v31, %v1752_v37  ;;  %v1776_v5 = vmul.f32 %v3128_v31, %v1751_v0 }
 0x777   : > { %v1807_v46 = vmul.f32 0.01, %v1783_v41  ;;  %v1806_v52 = vmul.f32 0.01, %v1782_v2  ;;  %v1805_v27 = vmul.f32 0.01, %v1781_v29  ;;  %v1775_v32 = vmul.f32 %v3128_v31, %v1750_v61 }
 0x778   : > { %v1804_v22 = vmul.f32 0.01, %v1780_v20  ;;  %v1803_v49 = vmul.f32 0.01, %v1779_v8  ;;  %v1802_v63 = vmul.f32 0.01, %v1778_v34  ;;  %v1774_v60 = vmul.f32 %v3128_v31, %v1749_v51 }
 0x779   : > { %v1831_v44 = vmax.f32 %v1783_v41, %v1807_v46  ;;  %v1830_v57 = vmax.f32 %v1782_v2, %v1806_v52  ;;  %v1829_v15 = vmax.f32 %v1781_v29, %v1805_v27  ;;  %v1801_v55 = vmul.f32 0.01, %v1777_v48 }
 0x77a   : > { %v1773_v40 = vmul.f32 %v3128_v31, %v1748_v21  ;;  %v1828_v59 = vmax.f32 %v1780_v20, %v1804_v22  ;;  %v1800_v35 = vmul.f32 0.01, %v1776_v5  ;;  %v1772_v33 = vmul.f32 %v3128_v31, %v1747_v50 }
 0x77b   : > { %1850 = vmatprep.subr.mxu1 %v1831_v44  ;;  %v1827_v24 = vmax.f32 %v1779_v8, %v1803_v49  ;;  %v1799_v45 = vmul.f32 0.01, %v1775_v32  ;;  %v1771_v16 = vmul.f32 %v3128_v31, %v1746_v25  ;;  %v1826_v26 = vmax.f32 %v1778_v34, %v1802_v63  ;;  %v1837_v25 = vpop.permute.xlu0 %1836 }
 0x77c   : > { %1851 = vmatpush1.msra.mxu1 %v1830_v57  ;;  %v1798_v17 = vmul.f32 0.01, %v1774_v60  ;;  %v1770_v11 = vmul.f32 %v3128_v31, %v1745_v58  ;;  %v1825_v4 = vmax.f32 %v1777_v48, %v1801_v55  ;;  %v1797_v42 = vmul.f32 0.01, %v1773_v40 }
 0x77d   : > { %1852 = vmatprep.subr.mxu1 %v1829_v15  ;;  %v1769_v12 = vmul.f32 %v3128_v31, %v1744_v62  ;;  %v1824_v30 = vmax.f32 %v1776_v5, %v1800_v35  ;;  %v1796_v7 = vmul.f32 0.01, %v1772_v33  ;;  %v1768_v19 = vmul.f32 %v3128_v31, %v1743_v39 }
 0x77e   : > { %1853 = vmatpush1.msra.mxu1 %v1828_v59  ;;  %v1741_v14 = vsub.f32 %v3030_v18, %v3118_v6  ;;  %v1823_v1 = vmax.f32 %v1775_v32, %v1799_v45  ;;  %v1795_v28 = vmul.f32 0.01, %v1771_v16  ;;  %v1767_v3 = vmul.f32 %v3128_v31, %v1742_v9 }
 0x77f   : > { %1854 = vmatprep.subr.mxu1 %v1827_v24  ;;  %v1740_v54 = vsub.f32 %v3025_v56, %v3118_v6  ;;  %v1822_v10 = vmax.f32 %v1774_v60, %v1798_v17  ;;  %v1794_v43 = vmul.f32 0.01, %v1770_v11  ;;  %v1739_v37 = vsub.f32 %v3020_v47, %v3118_v6 }
 0x780   : > { %1855 = vmatpush1.msra.mxu1 %v1826_v26  ;;  %v1766_v13 = vmul.f32 %v3128_v31, %v1741_v14  ;;  %v1821_v41 = vmax.f32 %v1773_v40, %v1797_v42  ;;  %v1793_v2 = vmul.f32 0.01, %v1769_v12  ;;  %v1738_v29 = vsub.f32 %v3015_v36, %v3118_v6  ;;  %v1832_v40 = vld [vmem:[%s3213_s8] sm:$0x7] }
 0x781   : > { %1856 = vmatprep.subr.mxu1 %v1825_v4  ;;  %v1765_v18 = vmul.f32 %v3128_v31, %v1740_v54  ;;  %v1820_v20 = vmax.f32 %v1772_v33, %v1796_v7  ;;  %v1792_v8 = vmul.f32 0.01, %v1768_v19  ;;  %v1764_v56 = vmul.f32 %v3128_v31, %v1739_v37 }
 0x782   : > { %1857 = vmatpush1.msra.mxu1 %v1824_v30  ;;  %v1737_v34 = vsub.f32 %v3010_v53, %v3118_v6  ;;  %v1819_v0 = vmax.f32 %v1771_v16, %v1795_v28  ;;  %v1791_v61 = vmul.f32 0.01, %v1767_v3  ;;  %v1763_v47 = vmul.f32 %v3128_v31, %v1738_v29 }
 0x783   : > { %1858 = vmatprep.subr.mxu1 %v1823_v1  ;;  %v1736_v46 = vsub.f32 %v3002_v38, %v3118_v6  ;;  %v1818_v52 = vmax.f32 %v1770_v11, %v1794_v43  ;;  %v1790_v27 = vmul.f32 0.01, %v1766_v13  ;;  %v1735_v48 = vsub.f32 %v3000_v23, %v3118_v6 }
 0x784   : > { %1859 = vmatpush1.msra.mxu1 %v1822_v10  ;;  %v1762_v36 = vmul.f32 %v3128_v31, %v1737_v34  ;;  %v1817_v22 = vmax.f32 %v1769_v12, %v1793_v2  ;;  %v1789_v5 = vmul.f32 0.01, %v1765_v18  ;;  %v1816_v51 = vmax.f32 %v1768_v19, %v1792_v8 }
 0x785   : > { %1860 = vmatprep.subr.mxu1 %v1821_v41  ;;  %v1761_v53 = vmul.f32 %v3128_v31, %v1736_v46  ;;  %v1788_v21 = vmul.f32 0.01, %v1764_v56  ;;  %v1760_v44 = vmul.f32 %v3128_v31, %v1735_v48  ;;  %v1815_v38 = vmax.f32 %v1767_v3, %v1791_v61 }
 0x786   : > { %1861 = vmatpush1.msra.mxu1 %v1820_v20  ;;  %v1787_v57 = vmul.f32 0.01, %v1763_v47  ;;  %v1814_v49 = vmax.f32 %v1766_v13, %v1790_v27  ;;  %v1786_v32 = vmul.f32 0.01, %v1762_v36  ;;  %v1813_v63 = vmax.f32 %v1765_v18, %v1789_v5 }
 0x787   : > { %1862 = vmatprep.subr.mxu1 %v1819_v0  ;;  %v1785_v60 = vmul.f32 0.01, %v1761_v53  ;;  %v1812_v23 = vmax.f32 %v1764_v56, %v1788_v21  ;;  %v1784_v6 = vmul.f32 0.01, %v1760_v44 }
 0x788   : > { %1863 = vmatpush1.msra.mxu1 %v1818_v52  ;;  %v1811_v50 = vmax.f32 %v1763_v47, %v1787_v57  ;;  %v1810_v15 = vmax.f32 %v1762_v36, %v1786_v32 }
 0x789   : > { %1864 = vmatprep.subr.mxu1 %v1817_v22  ;;  %v1809_v55 = vmax.f32 %v1761_v53, %v1785_v60  ;;  %v1808_v31 = vmax.f32 %v1760_v44, %v1784_v6 }
 0x78a   : > { %1865 = vmatpush1.msra.mxu1 %v1816_v51 }
 0x78b   : > { %1866 = vmatprep.subr.mxu1 %v1815_v38 }
 0x78c   : > { %1867 = vmatpush1.msra.mxu1 %v1814_v49 }
 0x78d   : > { %1868 = vmatprep.subr.mxu1 %v1813_v63 }
 0x78e   : > { %1869 = vmatpush1.msra.mxu1 %v1812_v23 }
 0x78f   : > { %1870 = vmatprep.subr.mxu1 %v1811_v50 }
 0x790   : > { %1871 = vmatpush1.msra.mxu1 %v1810_v15 }
 0x791   : > { %1872 = vmatprep.subr.mxu1 %v1809_v55 }
 0x792   : > { %1873 = vmatpush1.msra.mxu1 %v1808_v31 }
 0x793   : > { %2035 = vmatmul.mubr.msk.f32.vlgmr.msra.gmra.mxu1 %vm983_vm4, %v1832_v40 }
 0x853   : > { %v1908_v59 = vpop.f32.mrf.mxu1 }
 0x854   : > { %v1909_v35 = vadd.f32 %v1908_v59, %v1837_v25 }
 0x855   : > { %v1910_v33 = vpop.f32.mrf.mxu1 }
 0x856   : > { %v1911_v58 = vadd.f32 %v1910_v33, %v1837_v25  ;;  %v1913_v24 = vmul.f32 %v1909_v35, %v1909_v35 }
 0x858   : > { %v1914_v45 = vmul.f32 %v1911_v58, %v1911_v58 }
 0x85a   : > { %v1917_v16 = vcombine.low %v1913_v24, %v1914_v45 }
 0x85c   : > { %1919 = vst [vmem:[%s373_s11] sm:$0x77] %v1917_v16 }
 0x85d PF: > { %s21_s13 = sadd.s32 1, %s2148_s13  }
 0x85e   : > { %p18_p1 = scmp.ge.s32.totalorder %s21_s13, 4  }
 0x860   :  { %20 = sbr.rel (!%p18_p1) target bundleno = 1 (0x1), region = 95 }
 0x865   :  { %1941 = vsyncpa [#allocation3], 1 }
 0x866   :  { %1943 = vsyncpa [#allocation3 + $0x1], 1 }

</bundles_post_ra>
